<compile_context>
chip_gen: v7x
topology: tpu7x:2x2x1
jax: 0.10.0
libtpu: 0.0.40
codegen_flags: <defaults>
</compile_context>

<pallas_src>
import jax
import jax.numpy as jnp
import numpy as np
from jax.experimental import pallas as pl
from jax.experimental.pallas import tpu as pltpu

# Small, self-consistent hyper-parameters for Concate_Model_MF.
B = 2
META_IN, META_HID, META_OUT = 8, 32, 16
DIM = 440            # channels of the RegNet-Y-400MF trunk output ("dim")
PRED = 128           # pred_dim; also cli_img_out == der_img_out
H = W = 6            # spatial size of the backbone feature map
HO, WO = H - 2, W - 2
NUM_CLASSES = 6
FUSE = META_OUT + PRED + PRED
NBR = 2 * B          # (branch=cli/der) x batch rows
NHW = NBR * H * W    # 144 flattened conv rows (all branches/batches/positions)
PAD = 16             # scratch tail rows so shifted reads stay in-bounds & finite
MROW = 8             # sublane-padded row count for the tiny per-sample matmuls
HEAD_W = 128         # lane-dense packed head output width
# packed head columns: [f6 0:6 | f2 6:8 | c6 8:14 | d6 14:20 | c2 20:22 | d2 22:24 | pad]


def bn_fold(gamma, beta, mean, var, eps=1e-5):
    s = gamma / jnp.sqrt(var + eps)
    return s, beta - mean * s


# ----------------------------- fused forward kernel -----------------------------
def fused_forward_kernel(meta_ref, feats_ref, selc_ref, seld_ref,
                         mw1_ref, mb1_ref, mw2_ref, mb2_ref, ms_ref, mt_ref,
                         pw1_ref, ps1_ref, pb1_ref, pw3_ref, ps2_ref, pb2_ref,
                         whm_ref, whc_ref, whd_ref, bh_ref,
                         o_ref, a_buf):
    f32 = jnp.float32
    bf16 = jnp.bfloat16

    # ---- meta subnet MLP: Linear -> ReLU -> Linear -> BN(eval, folded) -> ReLU ----
    h = jnp.maximum(jnp.dot(meta_ref[...], mw1_ref[...],
                            preferred_element_type=f32) + mb1_ref[...], 0.0)
    y = jnp.dot(h, mw2_ref[...], preferred_element_type=f32) + mb2_ref[...]
    meta_h = jnp.maximum(y * ms_ref[...] + mt_ref[...], 0.0)            # (8, META_OUT)

    # ---- shared "pull" head, both image branches + batch fused on the row axis ----
    # 1x1 conv == one (NHW, DIM) x (DIM, PRED) matmul, then folded BN + ReLU.
    a = jnp.dot(feats_ref[...].astype(bf16), pw1_ref[...],
                preferred_element_type=f32)                             # (NHW, PRED)
    a = jnp.maximum(a * ps1_ref[...] + pb1_ref[...], 0.0)
    a_buf[pl.ds(0, NHW), :] = a
    a_buf[pl.ds(NHW, PAD), :] = jnp.zeros((PAD, PRED), f32)   # shifted reads stay finite

    # 3x3 "valid" conv as 9 row-shifted full-width matmuls over all positions.
    # Rows that correspond to invalid (out-of-window) output positions are
    # discarded by the pooling selection matmuls below.
    acc = jnp.zeros((NHW, PRED), f32)
    for dy in range(3):
        for dx in range(3):
            sh = a_buf[pl.ds(dy * W + dx, NHW), :].astype(bf16)
            acc = acc + jnp.dot(sh, pw3_ref[dy * 3 + dx], preferred_element_type=f32)
    y2 = jnp.maximum(acc * ps2_ref[...] + pb2_ref[...], 0.0)            # (NHW, PRED)

    # Masked 4x4 global-average-pool, one constant selection matrix per branch.
    p1 = jnp.dot(selc_ref[...], y2, preferred_element_type=f32)         # (8, PRED) cli
    p2 = jnp.dot(seld_ref[...], y2, preferred_element_type=f32)         # (8, PRED) der

    # ---- all six fc heads as one lane-dense packed matmul (column-packed weights) ----
    o_ref[...] = (jnp.dot(meta_h.astype(bf16), whm_ref[...], preferred_element_type=f32)
                  + jnp.dot(p1.astype(bf16), whc_ref[...], preferred_element_type=f32)
                  + jnp.dot(p2.astype(bf16), whd_ref[...], preferred_element_type=f32)
                  + bh_ref[...])


# ----------------------------- wrapper (single launch) ---------------------------
def concate_model_mf(kparams, meta_x, cli_feat_nchw, der_feat_nchw):
    # TODO(synk): the pretrained RegNet-Y-400MF backbones (cli_subnet / der_subnet)
    # are not re-implemented; the kernel consumes their (B, 440, h, w) NCHW feature
    # maps directly, which is everything downstream of the backbones in forward().
    feats = jnp.stack([cli_feat_nchw, der_feat_nchw], axis=0)           # (2, B, C, H, W)
    feats = jnp.transpose(feats, (0, 1, 3, 4, 2)).reshape(NHW, DIM)     # channels-last rows
    meta_pad = jnp.zeros((MROW, META_IN), jnp.float32).at[:B].set(meta_x)

    args = (meta_pad, feats, kparams['selc'], kparams['seld'],
            kparams['mw1'], kparams['mb1'], kparams['mw2'], kparams['mb2'],
            kparams['ms'], kparams['mt'],
            kparams['pw1'], kparams['ps1'], kparams['pb1'],
            kparams['pw3'], kparams['ps2'], kparams['pb2'],
            kparams['whm'], kparams['whc'], kparams['whd'], kparams['bh'])

    slab = pl.pallas_call(
        fused_forward_kernel,
        out_shape=jax.ShapeDtypeStruct((MROW, HEAD_W), jnp.float32),
        in_specs=[pl.BlockSpec(memory_space=pltpu.MemorySpace.VMEM) for _ in args],
        out_specs=pl.BlockSpec(memory_space=pltpu.MemorySpace.VMEM),
        scratch_shapes=[pltpu.VMEM((NHW + PAD, PRED), jnp.float32)],
    )(*args)

    out = slab[:B]
    return (out[:, 0:6], out[:, 6:8], out[:, 8:14],
            out[:, 14:20], out[:, 20:22], out[:, 22:24])


# ------------------------ deterministic parameter init ---------------------------
def init_params(key):
    ks = jax.random.split(key, 30)
    n = lambda k, shape, s=0.05: s * jax.random.normal(k, shape, jnp.float32)
    p = {}
    p['m_w1'] = n(ks[0], (META_IN, META_HID))
    p['m_b1'] = n(ks[1], (1, META_HID))
    p['m_w2'] = n(ks[2], (META_HID, META_OUT))
    p['m_b2'] = n(ks[3], (1, META_OUT))
    p['m_bn_s'], p['m_bn_t'] = bn_fold(1.0 + n(ks[4], (1, META_OUT), 0.1),
                                       n(ks[5], (1, META_OUT), 0.1),
                                       n(ks[6], (1, META_OUT), 0.1),
                                       jnp.abs(n(ks[7], (1, META_OUT), 0.3)) + 0.9)
    # shared "pull" head (same nn.Sequential applied to both image branches)
    p['p_w1'] = n(ks[8], (DIM, PRED), 0.03)
    p['p_s1'], p['p_t1'] = bn_fold(1.0 + n(ks[9], (1, PRED), 0.1),
                                   n(ks[10], (1, PRED), 0.1),
                                   n(ks[11], (1, PRED), 0.1),
                                   jnp.abs(n(ks[12], (1, PRED), 0.3)) + 0.9)
    p['p_w3'] = n(ks[13], (3, 3, PRED, PRED), 0.03)
    p['p_s2'], p['p_t2'] = bn_fold(1.0 + n(ks[14], (1, PRED), 0.1),
                                   n(ks[15], (1, PRED), 0.1),
                                   n(ks[16], (1, PRED), 0.1),
                                   jnp.abs(n(ks[17], (1, PRED), 0.3)) + 0.9)
    p['wf6'] = n(ks[18], (FUSE, NUM_CLASSES)); p['bf6'] = n(ks[19], (1, NUM_CLASSES))
    p['wf2'] = n(ks[20], (FUSE, 2));           p['bf2'] = n(ks[21], (1, 2))
    p['wc6'] = n(ks[22], (PRED, NUM_CLASSES)); p['bc6'] = n(ks[23], (1, NUM_CLASSES))
    p['wd6'] = n(ks[24], (PRED, NUM_CLASSES)); p['bd6'] = n(ks[25], (1, NUM_CLASSES))
    p['wc2'] = n(ks[26], (PRED, 2));           p['bc2'] = n(ks[27], (1, 2))
    p['wd2'] = n(ks[28], (PRED, 2));           p['bd2'] = n(ks[29], (1, 2))
    return p


def pack_params(p):
    """One-time packing into kernel-ready form (bf16 matmul weights, packed heads,
    pooling selection matrices)."""
    z = lambda r, c: jnp.zeros((r, c), jnp.float32)
    split = lambda w: (w[:META_OUT], w[META_OUT:META_OUT + PRED], w[META_OUT + PRED:])
    wf6m, wf6c, wf6d = split(p['wf6'])
    wf2m, wf2c, wf2d = split(p['wf2'])
    whm = jnp.concatenate([wf6m, wf2m, z(META_OUT, HEAD_W - 8)], axis=1)
    whc = jnp.concatenate([wf6c, wf2c, p['wc6'], z(PRED, NUM_CLASSES),
                           p['wc2'], z(PRED, 2), z(PRED, HEAD_W - 24)], axis=1)
    whd = jnp.concatenate([wf6d, wf2d, z(PRED, NUM_CLASSES), p['wd6'],
                           z(PRED, 2), p['wd2'], z(PRED, HEAD_W - 24)], axis=1)
    bh = jnp.concatenate([p['bf6'], p['bf2'], p['bc6'], p['bd6'],
                          p['bc2'], p['bd2'], z(1, HEAD_W - 24)], axis=1)

    # selection matrices: masked (valid 4x4 window only) global average pool per branch
    selc = np.zeros((MROW, NHW), np.float32)
    seld = np.zeros((MROW, NHW), np.float32)
    inv = 1.0 / (HO * WO)
    for b in range(B):
        for ho in range(HO):
            for wo in range(WO):
                selc[b, b * H * W + ho * W + wo] = inv            # branch 0 = cli
                seld[b, (B + b) * H * W + ho * W + wo] = inv      # branch 1 = der

    return dict(
        mw1=p['m_w1'], mb1=p['m_b1'], mw2=p['m_w2'], mb2=p['m_b2'],
        ms=p['m_bn_s'], mt=p['m_bn_t'],
        pw1=p['p_w1'].astype(jnp.bfloat16), ps1=p['p_s1'], pb1=p['p_t1'],
        pw3=p['p_w3'].reshape(9, PRED, PRED).astype(jnp.bfloat16),
        ps2=p['p_s2'], pb2=p['p_t2'],
        whm=whm.astype(jnp.bfloat16), whc=whc.astype(jnp.bfloat16),
        whd=whd.astype(jnp.bfloat16), bh=bh,
        selc=jnp.asarray(selc), seld=jnp.asarray(seld))


# ----------------------- pure-JAX reference for correctness ----------------------
def reference(p, meta_x, cli_feat, der_feat):
    h = jnp.maximum(meta_x @ p['m_w1'] + p['m_b1'], 0.0)
    y = h @ p['m_w2'] + p['m_b2']
    meta_h = jnp.maximum(y * p['m_bn_s'] + p['m_bn_t'], 0.0)

    def pull(feat):
        x = jnp.transpose(feat, (0, 2, 3, 1))
        a = jnp.einsum('bhwc,cd->bhwd', x, p['p_w1'])
        a = jnp.maximum(a * p['p_s1'] + p['p_t1'], 0.0)
        Ho, Wo = a.shape[1] - 2, a.shape[2] - 2
        acc = jnp.zeros((a.shape[0], Ho, Wo, PRED), jnp.float32)
        for dy in range(3):
            for dx in range(3):
                acc = acc + jnp.einsum('bhwc,cd->bhwd',
                                       a[:, dy:dy + Ho, dx:dx + Wo, :],
                                       p['p_w3'][dy, dx])
        y2 = jnp.maximum(acc * p['p_s2'] + p['p_t2'], 0.0)
        return jnp.mean(y2, axis=(1, 2))

    pt1, pt2 = pull(cli_feat), pull(der_feat)
    x = jnp.concatenate([meta_h, pt1, pt2], axis=-1)
    return (x @ p['wf6'] + p['bf6'], x @ p['wf2'] + p['bf2'],
            pt1 @ p['wc6'] + p['bc6'], pt2 @ p['wd6'] + p['bd6'],
            pt1 @ p['wc2'] + p['bc2'], pt2 @ p['wd2'] + p['bd2'])


if __name__ == "__main__":
    key = jax.random.PRNGKey(0)
    kp, k1, k2, k3 = jax.random.split(key, 4)
    params = init_params(kp)
    kparams = pack_params(params)
    meta_x = jax.random.normal(k1, (B, META_IN), jnp.float32)
    cli_feat = jax.random.normal(k2, (B, DIM, H, W), jnp.float32)   # RegNet trunk output
    der_feat = jax.random.normal(k3, (B, DIM, H, W), jnp.float32)

    fwd = jax.jit(concate_model_mf)
    outs = jax.block_until_ready(fwd(kparams, meta_x, cli_feat, der_feat))
    refs = reference(params, meta_x, cli_feat, der_feat)
    for o, r in zip(outs, refs):
        assert o.shape == r.shape, (o.shape, r.shape)
        np.testing.assert_allclose(np.asarray(o), np.asarray(r), rtol=2e-2, atol=2e-2)
    print("KERNEL_OK")
</pallas_src>

<mosaic_0001>
module attributes {stable_mosaic.version = 11 : i64} {
  func.func @fused_forward_kernel(%arg0: memref<8x8xf32, #tpu.memory_space<vmem>>, %arg1: memref<144x440xf32, #tpu.memory_space<vmem>>, %arg2: memref<8x144xf32, #tpu.memory_space<vmem>>, %arg3: memref<8x144xf32, #tpu.memory_space<vmem>>, %arg4: memref<8x32xf32, #tpu.memory_space<vmem>>, %arg5: memref<1x32xf32, #tpu.memory_space<vmem>>, %arg6: memref<32x16xf32, #tpu.memory_space<vmem>>, %arg7: memref<1x16xf32, #tpu.memory_space<vmem>>, %arg8: memref<1x16xf32, #tpu.memory_space<vmem>>, %arg9: memref<1x16xf32, #tpu.memory_space<vmem>>, %arg10: memref<440x128xbf16, #tpu.memory_space<vmem>>, %arg11: memref<1x128xf32, #tpu.memory_space<vmem>>, %arg12: memref<1x128xf32, #tpu.memory_space<vmem>>, %arg13: memref<9x128x128xbf16, #tpu.memory_space<vmem>>, %arg14: memref<1x128xf32, #tpu.memory_space<vmem>>, %arg15: memref<1x128xf32, #tpu.memory_space<vmem>>, %arg16: memref<16x128xbf16, #tpu.memory_space<vmem>>, %arg17: memref<128x128xbf16, #tpu.memory_space<vmem>>, %arg18: memref<128x128xbf16, #tpu.memory_space<vmem>>, %arg19: memref<1x128xf32, #tpu.memory_space<vmem>>, %arg20: memref<8x128xf32, #tpu.memory_space<vmem>>, %arg21: memref<160x128xf32, #tpu.memory_space<vmem>>) attributes {dimension_semantics = [], scalar_prefetch = 0 : i64, scratch_operands = 1 : i64, tpu.core_type = #tpu.core_type<tc>} {
    %c0 = arith.constant 0 : index
    %c0_0 = arith.constant 0 : index
    %0 = vector.load %arg0[%c0, %c0_0] : memref<8x8xf32, #tpu.memory_space<vmem>>, vector<8x8xf32>
    %c0_1 = arith.constant 0 : index
    %c0_2 = arith.constant 0 : index
    %1 = vector.load %arg4[%c0_1, %c0_2] : memref<8x32xf32, #tpu.memory_space<vmem>>, vector<8x32xf32>
    %cst = arith.constant dense<0.000000e+00> : vector<8x32xf32>
    %2 = tpu.matmul %0, %1, %cst {dimension_numbers = #tpu.dot_dimension_numbers<[1], [0], [0], [1], [0, 0, 1, 1], [], []>} : vector<8x8xf32>, vector<8x32xf32>, vector<8x32xf32> -> vector<8x32xf32>
    %c0_3 = arith.constant 0 : index
    %c0_4 = arith.constant 0 : index
    %3 = vector.load %arg5[%c0_3, %c0_4] : memref<1x32xf32, #tpu.memory_space<vmem>>, vector<1x32xf32>
    %4 = vector.broadcast %3 : vector<1x32xf32> to vector<8x32xf32>
    %5 = arith.addf %2, %4 : vector<8x32xf32>
    %cst_5 = arith.constant 0.000000e+00 : f32
    %6 = vector.broadcast %cst_5 : f32 to vector<8x32xf32>
    %7 = arith.maximumf %5, %6 : vector<8x32xf32>
    %c0_6 = arith.constant 0 : index
    %c0_7 = arith.constant 0 : index
    %8 = vector.load %arg6[%c0_6, %c0_7] : memref<32x16xf32, #tpu.memory_space<vmem>>, vector<32x16xf32>
    %cst_8 = arith.constant dense<0.000000e+00> : vector<8x16xf32>
    %9 = tpu.matmul %7, %8, %cst_8 {dimension_numbers = #tpu.dot_dimension_numbers<[1], [0], [0], [1], [0, 0, 1, 1], [], []>} : vector<8x32xf32>, vector<32x16xf32>, vector<8x16xf32> -> vector<8x16xf32>
    %c0_9 = arith.constant 0 : index
    %c0_10 = arith.constant 0 : index
    %10 = vector.load %arg7[%c0_9, %c0_10] : memref<1x16xf32, #tpu.memory_space<vmem>>, vector<1x16xf32>
    %11 = vector.broadcast %10 : vector<1x16xf32> to vector<8x16xf32>
    %12 = arith.addf %9, %11 : vector<8x16xf32>
    %c0_11 = arith.constant 0 : index
    %c0_12 = arith.constant 0 : index
    %13 = vector.load %arg8[%c0_11, %c0_12] : memref<1x16xf32, #tpu.memory_space<vmem>>, vector<1x16xf32>
    %14 = vector.broadcast %13 : vector<1x16xf32> to vector<8x16xf32>
    %15 = arith.mulf %12, %14 : vector<8x16xf32>
    %c0_13 = arith.constant 0 : index
    %c0_14 = arith.constant 0 : index
    %16 = vector.load %arg9[%c0_13, %c0_14] : memref<1x16xf32, #tpu.memory_space<vmem>>, vector<1x16xf32>
    %17 = vector.broadcast %16 : vector<1x16xf32> to vector<8x16xf32>
    %18 = arith.addf %15, %17 : vector<8x16xf32>
    %cst_15 = arith.constant 0.000000e+00 : f32
    %19 = vector.broadcast %cst_15 : f32 to vector<8x16xf32>
    %20 = arith.maximumf %18, %19 : vector<8x16xf32>
    %c0_16 = arith.constant 0 : index
    %c0_17 = arith.constant 0 : index
    %21 = vector.load %arg1[%c0_16, %c0_17] : memref<144x440xf32, #tpu.memory_space<vmem>>, vector<144x440xf32>
    %22 = arith.truncf %21 : vector<144x440xf32> to vector<144x440xbf16>
    %c0_18 = arith.constant 0 : index
    %c0_19 = arith.constant 0 : index
    %23 = vector.load %arg10[%c0_18, %c0_19] : memref<440x128xbf16, #tpu.memory_space<vmem>>, vector<440x128xbf16>
    %cst_20 = arith.constant dense<0.000000e+00> : vector<144x128xf32>
    %24 = tpu.matmul %22, %23, %cst_20 {dimension_numbers = #tpu.dot_dimension_numbers<[1], [0], [0], [1], [0, 0, 1, 1], [], []>} : vector<144x440xbf16>, vector<440x128xbf16>, vector<144x128xf32> -> vector<144x128xf32>
    %c0_21 = arith.constant 0 : index
    %c0_22 = arith.constant 0 : index
    %25 = vector.load %arg11[%c0_21, %c0_22] : memref<1x128xf32, #tpu.memory_space<vmem>>, vector<1x128xf32>
    %26 = vector.broadcast %25 : vector<1x128xf32> to vector<144x128xf32>
    %27 = arith.mulf %24, %26 : vector<144x128xf32>
    %c0_23 = arith.constant 0 : index
    %c0_24 = arith.constant 0 : index
    %28 = vector.load %arg12[%c0_23, %c0_24] : memref<1x128xf32, #tpu.memory_space<vmem>>, vector<1x128xf32>
    %29 = vector.broadcast %28 : vector<1x128xf32> to vector<144x128xf32>
    %30 = arith.addf %27, %29 : vector<144x128xf32>
    %cst_25 = arith.constant 0.000000e+00 : f32
    %31 = vector.broadcast %cst_25 : f32 to vector<144x128xf32>
    %32 = arith.maximumf %30, %31 : vector<144x128xf32>
    %c0_26 = arith.constant 0 : index
    %c0_27 = arith.constant 0 : index
    %33 = vector.load %arg21[%c0_26, %c0_27] : memref<160x128xf32, #tpu.memory_space<vmem>>, vector<144x128xf32>
    tpu.vector_store %arg21[%c0_26, %c0_27], %32 {strides = array<i32>} : memref<160x128xf32, #tpu.memory_space<vmem>>, vector<144x128xf32>,
    %cst_28 = arith.constant 0.000000e+00 : f32
    %34 = vector.broadcast %cst_28 : f32 to vector<16x128xf32>
    %c144 = arith.constant 144 : index
    %c0_29 = arith.constant 0 : index
    %35 = vector.load %arg21[%c144, %c0_29] : memref<160x128xf32, #tpu.memory_space<vmem>>, vector<16x128xf32>
    tpu.vector_store %arg21[%c144, %c0_29], %34 {strides = array<i32>} : memref<160x128xf32, #tpu.memory_space<vmem>>, vector<16x128xf32>,
    %cst_30 = arith.constant 0.000000e+00 : f32
    %36 = vector.broadcast %cst_30 : f32 to vector<144x128xf32>
    %c0_31 = arith.constant 0 : index
    %c0_32 = arith.constant 0 : index
    %37 = vector.load %arg21[%c0_31, %c0_32] : memref<160x128xf32, #tpu.memory_space<vmem>>, vector<144x128xf32>
    %38 = arith.truncf %37 : vector<144x128xf32> to vector<144x128xbf16>
    %c0_33 = arith.constant 0 : index
    %c0_34 = arith.constant 0 : index
    %c0_35 = arith.constant 0 : index
    %39 = vector.load %arg13[%c0_33, %c0_34, %c0_35] : memref<9x128x128xbf16, #tpu.memory_space<vmem>>, vector<1x128x128xbf16>
    %40 = vector.shape_cast %39 : vector<1x128x128xbf16> to vector<128x128xbf16>
    %cst_36 = arith.constant dense<0.000000e+00> : vector<144x128xf32>
    %41 = tpu.matmul %38, %40, %cst_36 {dimension_numbers = #tpu.dot_dimension_numbers<[1], [0], [0], [1], [0, 0, 1, 1], [], []>} : vector<144x128xbf16>, vector<128x128xbf16>, vector<144x128xf32> -> vector<144x128xf32>
    %42 = arith.addf %36, %41 : vector<144x128xf32>
    %c1 = arith.constant 1 : index
    %c0_37 = arith.constant 0 : index
    %43 = vector.load %arg21[%c1, %c0_37] : memref<160x128xf32, #tpu.memory_space<vmem>>, vector<144x128xf32>
    %44 = arith.truncf %43 : vector<144x128xf32> to vector<144x128xbf16>
    %c1_38 = arith.constant 1 : index
    %c0_39 = arith.constant 0 : index
    %c0_40 = arith.constant 0 : index
    %45 = vector.load %arg13[%c1_38, %c0_39, %c0_40] : memref<9x128x128xbf16, #tpu.memory_space<vmem>>, vector<1x128x128xbf16>
    %46 = vector.shape_cast %45 : vector<1x128x128xbf16> to vector<128x128xbf16>
    %cst_41 = arith.constant dense<0.000000e+00> : vector<144x128xf32>
    %47 = tpu.matmul %44, %46, %cst_41 {dimension_numbers = #tpu.dot_dimension_numbers<[1], [0], [0], [1], [0, 0, 1, 1], [], []>} : vector<144x128xbf16>, vector<128x128xbf16>, vector<144x128xf32> -> vector<144x128xf32>
    %48 = arith.addf %42, %47 : vector<144x128xf32>
    %c2 = arith.constant 2 : index
    %c0_42 = arith.constant 0 : index
    %49 = vector.load %arg21[%c2, %c0_42] : memref<160x128xf32, #tpu.memory_space<vmem>>, vector<144x128xf32>
    %50 = arith.truncf %49 : vector<144x128xf32> to vector<144x128xbf16>
    %c2_43 = arith.constant 2 : index
    %c0_44 = arith.constant 0 : index
    %c0_45 = arith.constant 0 : index
    %51 = vector.load %arg13[%c2_43, %c0_44, %c0_45] : memref<9x128x128xbf16, #tpu.memory_space<vmem>>, vector<1x128x128xbf16>
    %52 = vector.shape_cast %51 : vector<1x128x128xbf16> to vector<128x128xbf16>
    %cst_46 = arith.constant dense<0.000000e+00> : vector<144x128xf32>
    %53 = tpu.matmul %50, %52, %cst_46 {dimension_numbers = #tpu.dot_dimension_numbers<[1], [0], [0], [1], [0, 0, 1, 1], [], []>} : vector<144x128xbf16>, vector<128x128xbf16>, vector<144x128xf32> -> vector<144x128xf32>
    %54 = arith.addf %48, %53 : vector<144x128xf32>
    %c6 = arith.constant 6 : index
    %c0_47 = arith.constant 0 : index
    %55 = vector.load %arg21[%c6, %c0_47] : memref<160x128xf32, #tpu.memory_space<vmem>>, vector<144x128xf32>
    %56 = arith.truncf %55 : vector<144x128xf32> to vector<144x128xbf16>
    %c3 = arith.constant 3 : index
    %c0_48 = arith.constant 0 : index
    %c0_49 = arith.constant 0 : index
    %57 = vector.load %arg13[%c3, %c0_48, %c0_49] : memref<9x128x128xbf16, #tpu.memory_space<vmem>>, vector<1x128x128xbf16>
    %58 = vector.shape_cast %57 : vector<1x128x128xbf16> to vector<128x128xbf16>
    %cst_50 = arith.constant dense<0.000000e+00> : vector<144x128xf32>
    %59 = tpu.matmul %56, %58, %cst_50 {dimension_numbers = #tpu.dot_dimension_numbers<[1], [0], [0], [1], [0, 0, 1, 1], [], []>} : vector<144x128xbf16>, vector<128x128xbf16>, vector<144x128xf32> -> vector<144x128xf32>
    %60 = arith.addf %54, %59 : vector<144x128xf32>
    %c7 = arith.constant 7 : index
    %c0_51 = arith.constant 0 : index
    %61 = vector.load %arg21[%c7, %c0_51] : memref<160x128xf32, #tpu.memory_space<vmem>>, vector<144x128xf32>
    %62 = arith.truncf %61 : vector<144x128xf32> to vector<144x128xbf16>
    %c4 = arith.constant 4 : index
    %c0_52 = arith.constant 0 : index
    %c0_53 = arith.constant 0 : index
    %63 = vector.load %arg13[%c4, %c0_52, %c0_53] : memref<9x128x128xbf16, #tpu.memory_space<vmem>>, vector<1x128x128xbf16>
    %64 = vector.shape_cast %63 : vector<1x128x128xbf16> to vector<128x128xbf16>
    %cst_54 = arith.constant dense<0.000000e+00> : vector<144x128xf32>
    %65 = tpu.matmul %62, %64, %cst_54 {dimension_numbers = #tpu.dot_dimension_numbers<[1], [0], [0], [1], [0, 0, 1, 1], [], []>} : vector<144x128xbf16>, vector<128x128xbf16>, vector<144x128xf32> -> vector<144x128xf32>
    %66 = arith.addf %60, %65 : vector<144x128xf32>
    %c8 = arith.constant 8 : index
    %c0_55 = arith.constant 0 : index
    %67 = vector.load %arg21[%c8, %c0_55] : memref<160x128xf32, #tpu.memory_space<vmem>>, vector<144x128xf32>
    %68 = arith.truncf %67 : vector<144x128xf32> to vector<144x128xbf16>
    %c5 = arith.constant 5 : index
    %c0_56 = arith.constant 0 : index
    %c0_57 = arith.constant 0 : index
    %69 = vector.load %arg13[%c5, %c0_56, %c0_57] : memref<9x128x128xbf16, #tpu.memory_space<vmem>>, vector<1x128x128xbf16>
    %70 = vector.shape_cast %69 : vector<1x128x128xbf16> to vector<128x128xbf16>
    %cst_58 = arith.constant dense<0.000000e+00> : vector<144x128xf32>
    %71 = tpu.matmul %68, %70, %cst_58 {dimension_numbers = #tpu.dot_dimension_numbers<[1], [0], [0], [1], [0, 0, 1, 1], [], []>} : vector<144x128xbf16>, vector<128x128xbf16>, vector<144x128xf32> -> vector<144x128xf32>
    %72 = arith.addf %66, %71 : vector<144x128xf32>
    %c12 = arith.constant 12 : index
    %c0_59 = arith.constant 0 : index
    %73 = vector.load %arg21[%c12, %c0_59] : memref<160x128xf32, #tpu.memory_space<vmem>>, vector<144x128xf32>
    %74 = arith.truncf %73 : vector<144x128xf32> to vector<144x128xbf16>
    %c6_60 = arith.constant 6 : index
    %c0_61 = arith.constant 0 : index
    %c0_62 = arith.constant 0 : index
    %75 = vector.load %arg13[%c6_60, %c0_61, %c0_62] : memref<9x128x128xbf16, #tpu.memory_space<vmem>>, vector<1x128x128xbf16>
    %76 = vector.shape_cast %75 : vector<1x128x128xbf16> to vector<128x128xbf16>
    %cst_63 = arith.constant dense<0.000000e+00> : vector<144x128xf32>
    %77 = tpu.matmul %74, %76, %cst_63 {dimension_numbers = #tpu.dot_dimension_numbers<[1], [0], [0], [1], [0, 0, 1, 1], [], []>} : vector<144x128xbf16>, vector<128x128xbf16>, vector<144x128xf32> -> vector<144x128xf32>
    %78 = arith.addf %72, %77 : vector<144x128xf32>
    %c13 = arith.constant 13 : index
    %c0_64 = arith.constant 0 : index
    %79 = vector.load %arg21[%c13, %c0_64] : memref<160x128xf32, #tpu.memory_space<vmem>>, vector<144x128xf32>
    %80 = arith.truncf %79 : vector<144x128xf32> to vector<144x128xbf16>
    %c7_65 = arith.constant 7 : index
    %c0_66 = arith.constant 0 : index
    %c0_67 = arith.constant 0 : index
    %81 = vector.load %arg13[%c7_65, %c0_66, %c0_67] : memref<9x128x128xbf16, #tpu.memory_space<vmem>>, vector<1x128x128xbf16>
    %82 = vector.shape_cast %81 : vector<1x128x128xbf16> to vector<128x128xbf16>
    %cst_68 = arith.constant dense<0.000000e+00> : vector<144x128xf32>
    %83 = tpu.matmul %80, %82, %cst_68 {dimension_numbers = #tpu.dot_dimension_numbers<[1], [0], [0], [1], [0, 0, 1, 1], [], []>} : vector<144x128xbf16>, vector<128x128xbf16>, vector<144x128xf32> -> vector<144x128xf32>
    %84 = arith.addf %78, %83 : vector<144x128xf32>
    %c14 = arith.constant 14 : index
    %c0_69 = arith.constant 0 : index
    %85 = vector.load %arg21[%c14, %c0_69] : memref<160x128xf32, #tpu.memory_space<vmem>>, vector<144x128xf32>
    %86 = arith.truncf %85 : vector<144x128xf32> to vector<144x128xbf16>
    %c8_70 = arith.constant 8 : index
    %c0_71 = arith.constant 0 : index
    %c0_72 = arith.constant 0 : index
    %87 = vector.load %arg13[%c8_70, %c0_71, %c0_72] : memref<9x128x128xbf16, #tpu.memory_space<vmem>>, vector<1x128x128xbf16>
    %88 = vector.shape_cast %87 : vector<1x128x128xbf16> to vector<128x128xbf16>
    %cst_73 = arith.constant dense<0.000000e+00> : vector<144x128xf32>
    %89 = tpu.matmul %86, %88, %cst_73 {dimension_numbers = #tpu.dot_dimension_numbers<[1], [0], [0], [1], [0, 0, 1, 1], [], []>} : vector<144x128xbf16>, vector<128x128xbf16>, vector<144x128xf32> -> vector<144x128xf32>
    %90 = arith.addf %84, %89 : vector<144x128xf32>
    %c0_74 = arith.constant 0 : index
    %c0_75 = arith.constant 0 : index
    %91 = vector.load %arg14[%c0_74, %c0_75] : memref<1x128xf32, #tpu.memory_space<vmem>>, vector<1x128xf32>
    %92 = vector.broadcast %91 : vector<1x128xf32> to vector<144x128xf32>
    %93 = arith.mulf %90, %92 : vector<144x128xf32>
    %c0_76 = arith.constant 0 : index
    %c0_77 = arith.constant 0 : index
    %94 = vector.load %arg15[%c0_76, %c0_77] : memref<1x128xf32, #tpu.memory_space<vmem>>, vector<1x128xf32>
    %95 = vector.broadcast %94 : vector<1x128xf32> to vector<144x128xf32>
    %96 = arith.addf %93, %95 : vector<144x128xf32>
    %cst_78 = arith.constant 0.000000e+00 : f32
    %97 = vector.broadcast %cst_78 : f32 to vector<144x128xf32>
    %98 = arith.maximumf %96, %97 : vector<144x128xf32>
    %c0_79 = arith.constant 0 : index
    %c0_80 = arith.constant 0 : index
    %99 = vector.load %arg2[%c0_79, %c0_80] : memref<8x144xf32, #tpu.memory_space<vmem>>, vector<8x144xf32>
    %cst_81 = arith.constant dense<0.000000e+00> : vector<8x128xf32>
    %100 = tpu.matmul %99, %98, %cst_81 {dimension_numbers = #tpu.dot_dimension_numbers<[1], [0], [0], [1], [0, 0, 1, 1], [], []>} : vector<8x144xf32>, vector<144x128xf32>, vector<8x128xf32> -> vector<8x128xf32>
    %c0_82 = arith.constant 0 : index
    %c0_83 = arith.constant 0 : index
    %101 = vector.load %arg3[%c0_82, %c0_83] : memref<8x144xf32, #tpu.memory_space<vmem>>, vector<8x144xf32>
    %cst_84 = arith.constant dense<0.000000e+00> : vector<8x128xf32>
    %102 = tpu.matmul %101, %98, %cst_84 {dimension_numbers = #tpu.dot_dimension_numbers<[1], [0], [0], [1], [0, 0, 1, 1], [], []>} : vector<8x144xf32>, vector<144x128xf32>, vector<8x128xf32> -> vector<8x128xf32>
    %103 = arith.truncf %20 : vector<8x16xf32> to vector<8x16xbf16>
    %c0_85 = arith.constant 0 : index
    %c0_86 = arith.constant 0 : index
    %104 = vector.load %arg16[%c0_85, %c0_86] : memref<16x128xbf16, #tpu.memory_space<vmem>>, vector<16x128xbf16>
    %cst_87 = arith.constant dense<0.000000e+00> : vector<8x128xf32>
    %105 = tpu.matmul %103, %104, %cst_87 {dimension_numbers = #tpu.dot_dimension_numbers<[1], [0], [0], [1], [0, 0, 1, 1], [], []>} : vector<8x16xbf16>, vector<16x128xbf16>, vector<8x128xf32> -> vector<8x128xf32>
    %106 = arith.truncf %100 : vector<8x128xf32> to vector<8x128xbf16>
    %c0_88 = arith.constant 0 : index
    %c0_89 = arith.constant 0 : index
    %107 = vector.load %arg17[%c0_88, %c0_89] : memref<128x128xbf16, #tpu.memory_space<vmem>>, vector<128x128xbf16>
    %cst_90 = arith.constant dense<0.000000e+00> : vector<8x128xf32>
    %108 = tpu.matmul %106, %107, %cst_90 {dimension_numbers = #tpu.dot_dimension_numbers<[1], [0], [0], [1], [0, 0, 1, 1], [], []>} : vector<8x128xbf16>, vector<128x128xbf16>, vector<8x128xf32> -> vector<8x128xf32>
    %109 = arith.addf %105, %108 : vector<8x128xf32>
    %110 = arith.truncf %102 : vector<8x128xf32> to vector<8x128xbf16>
    %c0_91 = arith.constant 0 : index
    %c0_92 = arith.constant 0 : index
    %111 = vector.load %arg18[%c0_91, %c0_92] : memref<128x128xbf16, #tpu.memory_space<vmem>>, vector<128x128xbf16>
    %cst_93 = arith.constant dense<0.000000e+00> : vector<8x128xf32>
    %112 = tpu.matmul %110, %111, %cst_93 {dimension_numbers = #tpu.dot_dimension_numbers<[1], [0], [0], [1], [0, 0, 1, 1], [], []>} : vector<8x128xbf16>, vector<128x128xbf16>, vector<8x128xf32> -> vector<8x128xf32>
    %113 = arith.addf %109, %112 : vector<8x128xf32>
    %c0_94 = arith.constant 0 : index
    %c0_95 = arith.constant 0 : index
    %114 = vector.load %arg19[%c0_94, %c0_95] : memref<1x128xf32, #tpu.memory_space<vmem>>, vector<1x128xf32>
    %115 = vector.broadcast %114 : vector<1x128xf32> to vector<8x128xf32>
    %116 = arith.addf %113, %115 : vector<8x128xf32>
    %c0_96 = arith.constant 0 : index
    %c0_97 = arith.constant 0 : index
    %117 = vector.load %arg20[%c0_96, %c0_97] : memref<8x128xf32, #tpu.memory_space<vmem>>, vector<8x128xf32>
    tpu.vector_store %arg20[%c0_96, %c0_97], %116 {strides = array<i32>} : memref<8x128xf32, #tpu.memory_space<vmem>>, vector<8x128xf32>,
    return
  }
}

</mosaic_0001>

<bundles_post_ra>
// kernel: concate_model_mf.1
= control target key start
LH: loop header
LB: loop body
LE: loop exit
PB: predicated region body
PF: predicated region fallthrough
CT: control target
= control target key end

     0   :  { %vm75_vm0 = vcmask 64512   ;;  %v4825_v0 = vmov 0.0   ;;  %vm4826_vm1 = vmmov 0   ;;  %v4827_v5 = vmov 0.0|0.0   ;;  %s6246_s4 = inlined_call_operand.vmem [shape: f32[8,32], index: 4, kind: input, shape index: {}]   ;;  %s6247_s0 = inlined_call_operand.vmem [shape: f32[8,8], index: 0, kind: input, shape index: {}]   ;;  %s6248_s6 = inlined_call_operand.vmem [shape: f32[32,16], index: 6, kind: input, shape index: {}]   ;;  %s6249_s10 = inlined_call_operand.vmem [shape: bf16[440,128], index: 10, kind: input, shape index: {}]   ;;  %s6250_s5 = inlined_call_operand.vmem [shape: f32[1,32], index: 5, kind: input, shape index: {}]   ;;  %s6251_s1 = inlined_call_operand.vmem [shape: f32[144,440], index: 1, kind: input, shape index: {}]   ;;  %s6252_s13 = inlined_call_operand.vmem [shape: bf16[9,128,128], index: 13, kind: input, shape index: {}]   ;;  %s6253_s11 = inlined_call_operand.vmem [shape: f32[1,128], index: 11, kind: input, shape index: {}]   ;;  %s6254_s12 = inlined_call_operand.vmem [shape: f32[1,128], index: 12, kind: input, shape index: {}]   ;;  %s6255_s2 = inlined_call_operand.vmem [shape: f32[8,144], index: 2, kind: input, shape index: {}]   ;;  %s6256_s17 = inlined_call_operand.vmem [shape: bf16[128,128], index: 17, kind: input, shape index: {}]   ;;  %s6257_s14 = inlined_call_operand.vmem [shape: f32[1,128], index: 14, kind: input, shape index: {}]   ;;  %s6258_s15 = inlined_call_operand.vmem [shape: f32[1,128], index: 15, kind: input, shape index: {}]   ;;  %s6259_s3 = inlined_call_operand.vmem [shape: f32[8,144], index: 3, kind: input, shape index: {}]   ;;  %s6260_s16 = inlined_call_operand.vmem [shape: bf16[16,128], index: 16, kind: input, shape index: {}]   ;;  %s6261_s18 = inlined_call_operand.vmem [shape: bf16[128,128], index: 18, kind: input, shape index: {}]   ;;  %s6262_s7 = inlined_call_operand.vmem [shape: f32[1,16], index: 7, kind: input, shape index: {}]   ;;  %s6263_s8 = inlined_call_operand.vmem [shape: f32[1,16], index: 8, kind: input, shape index: {}]   ;;  %s6264_s9 = inlined_call_operand.vmem [shape: f32[1,16], index: 9, kind: input, shape index: {}]   ;;  %s6265_s19 = inlined_call_operand.vmem [shape: f32[1,128], index: 19, kind: input, shape index: {}]   ;;  %s6266_s20 = inlined_call_operand.vmem [shape: f32[8,128], index: 20, kind: output, shape index: {}]  }
   0x1   :  { %6269 = sst [smem:[#allocation3_spill]] %s6246_s4  ;;  %3821 = vmatprep.subr.mxu1 %v4825_v0  ;;  %908 = vst [vmem:[#allocation2 + $0x90] sm:$0xff] %v4825_v0  ;;  %909 = vst [vmem:[#allocation2 + $0x98] sm:$0xff] %v4825_v0  ;;  %3823 = vmatprep.mubr.msk.f32.mxu1 %vm4826_vm1, %v4825_v0  ;;  %v253_v12 = vld [vmem:[%s6251_s1 + $0x8] sm:$0xff]  ;;  %vm161_vm2 = vcmask 261120   ;;  %v252_v34 = vld [vmem:[%s6251_s1] sm:$0xff] }
   0x2   :  { %6270 = sst [smem:[#allocation4_spill]] %s6247_s0  ;;  %s6274_s23 = sld [smem:[#allocation3_spill]]  ;;  %3941 = vmatprep.subr.bf16.mxu0 %v4825_v0  ;;  %3957 = vmatprep.mubr.msk.bf16.mxu0 %vm4826_vm1, %v4825_v0  ;;  %v257_v13 = vld [vmem:[%s6251_s1 + $0x28] sm:$0xff]  ;;  %v256_v35 = vld [vmem:[%s6251_s1 + $0x20] sm:$0xff]  ;;  %v4828_v41 = vmov 0   ;;  %vm608_vm3 = vcmask 1043456  }
   0x3   :  { %6271 = sst [smem:[#allocation5_spill]] %s6248_s6  ;;  %s6275_s25 = sld [smem:[#allocation4_spill]]  ;;  %v325_v18 = vpack.c.bf16 %v257_v13, %v253_v12  ;;  %v261_v36 = vld [vmem:[%s6251_s1 + $0x48] sm:$0xff]  ;;  %v324_v38 = vpack.c.bf16 %v256_v35, %v252_v34  ;;  %v260_v43 = vld [vmem:[%s6251_s1 + $0x40] sm:$0xff]  ;;  %vm580_vm4 = vcmask 457728   ;;  %vm2878_vm5 = vcmask 130048  }
   0x4   :  { %6272 = sst [smem:[#allocation6_spill]] %s6249_s10  ;;  %s6276_s27 = sld [smem:[#allocation5_spill]]  ;;  %v265_v37 = vld [vmem:[%s6251_s1 + $0x68] sm:$0xff]  ;;  %v264_v44 = vld [vmem:[%s6251_s1 + $0x60] sm:$0xff] }
   0x5   :  { %6273 = sst [smem:[#allocation7_spill]] %s6250_s5  ;;  %v329_v40 = vpack.c.bf16 %v265_v37, %v261_v36  ;;  %v269_v45 = vld [vmem:[%s6251_s1 + $0x88] sm:$0xff]  ;;  %v328_v47 = vpack.c.bf16 %v264_v44, %v260_v43  ;;  %v268_v50 = vld [vmem:[%s6251_s1 + $0x80] sm:$0xff]  ;;  %v255_v36 = vld [vmem:[%s6251_s1 + $0x18] sm:$0xff] }
   0x6   :  { %v273_v46 = vld [vmem:[%s6251_s1 + $0xa8] sm:$0xff]  ;;  %v272_v51 = vld [vmem:[%s6251_s1 + $0xa0] sm:$0xff]  ;;  %v259_v37 = vld [vmem:[%s6251_s1 + $0x38] sm:$0xff] }
   0x7   :  { %v333_v49 = vpack.c.bf16 %v273_v46, %v269_v45  ;;  %v277_v53 = vld [vmem:[%s6251_s1 + $0xc8] sm:$0xff]  ;;  %v332_v55 = vpack.c.bf16 %v272_v51, %v268_v50  ;;  %v276_v58 = vld [vmem:[%s6251_s1 + $0xc0] sm:$0xff]  ;;  %v267_v43 = vld [vmem:[%s6251_s1 + $0x78] sm:$0xff] }
   0x8   :  { %v67_v1 = vld [vmem:[%s6274_s23] sm:$0xff]  ;;  %s6277_s23 = sld [smem:[#allocation6_spill]]  ;;  %v281_v54 = vld [vmem:[%s6251_s1 + $0xe8] sm:$0xff]  ;;  %v262_v46 = vld [vmem:[%s6251_s1 + $0x50] sm:$0xff] }
   0x9   :  { %v66_v2 = vld [vmem:[%s6275_s25] sm:$0xff]  ;;  %3822 = vmatpush3.msra.mxu1 %v67_v1  ;;  %s6278_s25 = sld [smem:[#allocation7_spill]]  ;;  %v337_v56 = vpack.c.bf16 %v281_v54, %v277_v53  ;;  %v285_v61 = vld [vmem:[%s6251_s1 + $0x108] sm:$0xff]  ;;  %v274_v53 = vld [vmem:[%s6251_s1 + $0xb0] sm:$0xff] }
   0xa   :  { %v150_v3 = vld [vmem:[%s6276_s27] sm:$0xff]  ;;  %v151_v4 = vld [vmem:[%s6276_s27 + $0x8] sm:$0xff]  ;;  %3824 = vmatmul.mubr.msk.f32.vlgmr.msra.gmra.mrb[0].mxu1 %vm75_vm0, %v66_v2  ;;  %4351 = vmatprep.subr.bf16.mxu1 %v4827_v5  ;;  %v152_v7 = vld [vmem:[%s6276_s27 + $0x10] sm:$0xff] }
   0xb   :  { %v4352_v6 = vpack.c.bf16 %v151_v4, %v150_v3  ;;  %3834 = vmatprep.mubr.msk.f32.mxu1 %vm4826_vm1, %v4825_v0  ;;  %v153_v8 = vld [vmem:[%s6276_s27 + $0x18] sm:$0xff]  ;;  %v280_v59 = vld [vmem:[%s6251_s1 + $0xe0] sm:$0xff]  ;;  %v289_v62 = vld [vmem:[%s6251_s1 + $0x128] sm:$0xff] }
   0xc   :  { %v4355_v9 = vpack.c.bf16 %v153_v8, %v152_v7  ;;  %v336_v63 = vpack.c.bf16 %v280_v59, %v276_v58  ;;  %v341_v1 = vpack.c.bf16 %v289_v62, %v285_v61  ;;  %v284_v3 = vld [vmem:[%s6251_s1 + $0x100] sm:$0xff]  ;;  %v293_v7 = vld [vmem:[%s6251_s1 + $0x148] sm:$0xff]  ;;  %v279_v54 = vld [vmem:[%s6251_s1 + $0xd8] sm:$0xff] }
   0xd   :  { %4353 = vmatpush3.bf16.msra.mxu1 %v4352_v6  ;;  %v288_v4 = vld [vmem:[%s6251_s1 + $0x120] sm:$0xff]  ;;  %v297_v8 = vld [vmem:[%s6251_s1 + $0x168] sm:$0xff]  ;;  %v278_v58 = vld [vmem:[%s6251_s1 + $0xd0] sm:$0xff] }
   0xe   :  { %4354 = vmatprep.subr.bf16.mxu1 %v4827_v5  ;;  %v4701_v10 = vld [vmem:[%s6277_s23 + $0x40] sm:$0xff]   ;;  %v4703_v20 = vld [vmem:[%s6277_s23 + $0x48] sm:$0xff]   ;;  %v4705_v22 = vld [vmem:[%s6277_s23 + $0x50] sm:$0xff]  }
   0xf   :  { %v3303_v11 = vld [vmem:[%s6278_s25] ss:$0 sm:$0xff]  ;;  %v4704_v21 = vld [vmem:[%s6277_s23 + $0x8] sm:$0xff]   ;;  %v4706_v23 = vld [vmem:[%s6277_s23 + $0x10] sm:$0xff]  }
  0x10   :  { %v4702_v17 = vld [vmem:[%s6277_s23] sm:$0xff]   ;;  %v4707_v24 = vld [vmem:[%s6277_s23 + $0x58] sm:$0xff]   ;;  %v4711_v28 = vld [vmem:[%s6277_s23 + $0x68] sm:$0xff]  }
  0x11   :  { %4356 = vmatpush3.bf16.msra.mxu1 %v4355_v9  ;;  %v4708_v25 = vld [vmem:[%s6277_s23 + $0x18] sm:$0xff]   ;;  %v4709_v26 = vld [vmem:[%s6277_s23 + $0x60] sm:$0xff]   ;;  %v4712_v29 = vld [vmem:[%s6277_s23 + $0x28] sm:$0xff]   ;;  %v340_v9 = vpack.c.bf16 %v288_v4, %v284_v3 }
  0x12   :  { %3578 = vmatprep.subr.bf16.mxu1 %v4701_v10  ;;  %v4710_v27 = vld [vmem:[%s6277_s23 + $0x20] sm:$0xff]   ;;  %v4713_v30 = vld [vmem:[%s6277_s23 + $0x70] sm:$0xff]   ;;  %v4715_v32 = vld [vmem:[%s6277_s23 + $0x78] sm:$0xff]   ;;  %v345_v10 = vpack.c.bf16 %v297_v8, %v293_v7 }
  0x13   :  { %v4714_v31 = vld [vmem:[%s6277_s23 + $0x30] sm:$0xff]   ;;  %v4716_v33 = vld [vmem:[%s6277_s23 + $0x38] sm:$0xff]   ;;  %v4717_v39 = vld [vmem:[%s6277_s23 + $0x80] sm:$0xff]  }
  0x14   :  { %v4718_v42 = vld [vmem:[%s6277_s23 + $0x88] sm:$0xff]   ;;  %v4719_v48 = vld [vmem:[%s6277_s23 + $0x90] sm:$0xff]   ;;  %v4720_v52 = vld [vmem:[%s6277_s23 + $0x98] sm:$0xff]  }
  0x15   :  { %v4721_v57 = vld [vmem:[%s6277_s23 + $0xa0] sm:$0xff]   ;;  %v4722_v60 = vld [vmem:[%s6277_s23 + $0xa8] sm:$0xff]   ;;  %v4723_v2 = vld [vmem:[%s6277_s23 + $0xb0] sm:$0xff]  }
  0x16   :  { %v4724_v6 = vld [vmem:[%s6277_s23 + $0xb8] sm:$0xff]   ;;  %v292_v12 = vld [vmem:[%s6251_s1 + $0x140] sm:$0xff]  ;;  %v282_v59 = vld [vmem:[%s6251_s1 + $0xf0] sm:$0xff] }
  0x17   :  { %v296_v13 = vld [vmem:[%s6251_s1 + $0x160] sm:$0xff]  ;;  %v291_v61 = vld [vmem:[%s6251_s1 + $0x138] sm:$0xff]  ;;  %v338_v62 = vpack.c.bf16 %v282_v59, %v278_v58  ;;  %v294_v8 = vld [vmem:[%s6251_s1 + $0x150] sm:$0xff] }
  0x18   :  { %v316_v34 = vld [vmem:[%s6251_s1 + $0x200] sm:$0xff]  ;;  %v295_v3 = vld [vmem:[%s6251_s1 + $0x158] sm:$0xff] }
  0x19   :  { %v320_v35 = vld [vmem:[%s6251_s1 + $0x220] sm:$0xff]  ;;  %v299_v4 = vld [vmem:[%s6251_s1 + $0x178] sm:$0xff] }
  0x1a   :  { %v347_v7 = vpack.c.bf16 %v299_v4, %v295_v3 }
  0xdd   :  { %v145_v14 = vpop.f32.mrb[0].mxu1 }
  0xde   :  { %v146_v15 = vadd.f32 %v3303_v11, %v145_v14  ;;  %v3825_v16 = vpop.f32.mrb[1].mxu1  ;;  %v4725_v11 = vld [vmem:[%s6277_s23 + $0xc0] sm:$0xff]   ;;  %v4726_v14 = vld [vmem:[%s6277_s23 + $0xc8] sm:$0xff]  }
  0xdf   :  { %v305_v16 = vld [vmem:[%s6251_s1 + $0x1a8] sm:$0xff] }
  0xe0   :  { %v149_v19 = vmax.f32 %v146_v15, 0.0  ;;  %v301_v15 = vld [vmem:[%s6251_s1 + $0x188] sm:$0xff] }
  0xe2   :  { %3835 = vmatmul.mubr.msk.f32.vlgmr.msra.gmra.mrb[2].mxu1 %vm161_vm2, %v149_v19  ;;  %v4727_v19 = vld [vmem:[%s6277_s23 + $0xd0] sm:$0xff]  }
  0xe3   :  { %3579 = vmatpush3.bf16.msra.mxu1 %v4702_v17  ;;  %644 = vmatprep.mubr.bf16.mxu1 %v325_v18  ;;  %v344_v17 = vpack.c.bf16 %v296_v13, %v292_v12  ;;  %v349_v18 = vpack.c.bf16 %v305_v16, %v301_v15  ;;  %v306_v15 = vld [vmem:[%s6251_s1 + $0x1b0] sm:$0xff]  ;;  %v311_v16 = vld [vmem:[%s6251_s1 + $0x1d8] sm:$0xff] }
  0xe4   :  { %3580 = vmatprep.subr.bf16.mxu1 %v4703_v20  ;;  %v4728_v20 = vld [vmem:[%s6277_s23 + $0xd8] ss:$0 sps:$4 sm:$0xff]  }
  0xe7   :  { %3581 = vmatpush3.bf16.msra.mxu1 %v4704_v21  ;;  %v300_v21 = vld [vmem:[%s6251_s1 + $0x180] sm:$0xff] }
  0xe8   :  { %3582 = vmatprep.subr.bf16.mxu1 %v4705_v22  ;;  %v304_v22 = vld [vmem:[%s6251_s1 + $0x1a0] sm:$0xff] }
  0xeb   :  { %3583 = vmatpush3.bf16.msra.mxu1 %v4706_v23  ;;  %v309_v23 = vld [vmem:[%s6251_s1 + $0x1c8] sm:$0xff] }
  0xec   :  { %3584 = vmatprep.subr.bf16.mxu1 %v4707_v24  ;;  %v313_v24 = vld [vmem:[%s6251_s1 + $0x1e8] sm:$0xff] }
  0xef   :  { %3585 = vmatpush3.bf16.msra.mxu1 %v4708_v25  ;;  %v610_v25 = vsel %vm608_vm3, %v4728_v20, 0  ;;  %v310_v20 = vld [vmem:[%s6251_s1 + $0x1d0] sm:$0xff] }
  0xf0   :  { %3586 = vmatprep.subr.bf16.mxu1 %v4709_v26  ;;  %v348_v26 = vpack.c.bf16 %v304_v22, %v300_v21  ;;  %v314_v21 = vld [vmem:[%s6251_s1 + $0x1f0] sm:$0xff]  ;;  %v319_v22 = vld [vmem:[%s6251_s1 + $0x218] sm:$0xff] }
  0xf3   :  { %3587 = vmatpush3.bf16.msra.mxu1 %v4710_v27  ;;  %v353_v27 = vpack.c.bf16 %v313_v24, %v309_v23  ;;  %v323_v23 = vld [vmem:[%s6251_s1 + $0x238] sm:$0xff]  ;;  %v354_v24 = vpack.c.bf16 %v314_v21, %v310_v20 }
  0xf4   :  { %3588 = vmatprep.subr.bf16.mxu1 %v4711_v28  ;;  %v308_v28 = vld [vmem:[%s6251_s1 + $0x1c0] sm:$0xff] }
  0xf7   :  { %3589 = vmatpush3.bf16.msra.mxu1 %v4712_v29  ;;  %v312_v29 = vld [vmem:[%s6251_s1 + $0x1e0] sm:$0xff] }
  0xf8   :  { %3590 = vmatprep.subr.bf16.mxu1 %v4713_v30  ;;  %v317_v30 = vld [vmem:[%s6251_s1 + $0x208] sm:$0xff] }
  0xfb   :  { %3591 = vmatpush3.bf16.msra.mxu1 %v4714_v31  ;;  %v321_v31 = vld [vmem:[%s6251_s1 + $0x228] sm:$0xff] }
  0xfc   :  { %3592 = vmatprep.subr.bf16.mxu1 %v4715_v32  ;;  %v352_v32 = vpack.c.bf16 %v312_v29, %v308_v28  ;;  %v4729_v29 = vld [vmem:[%s6252_s13 + $0x40] sm:$0xff]  }
  0xff   :  { %3593 = vmatpush3.bf16.msra.mxu1 %v4716_v33  ;;  %v357_v33 = vpack.c.bf16 %v321_v31, %v317_v30  ;;  %v4730_v30 = vld [vmem:[%s6252_s13 + $0x80] sm:$0xff]   ;;  %v4731_v31 = vld [vmem:[%s6252_s13 + $0x48] sm:$0xff]  }
 0x100   :  { %717 = vmatprep.subr.bf16.mxu1 %v4828_v41  ;;  %3942 = vmatpush3.bf16.msra.mxu0 %v4730_v30 }
 0x101   :  { %3943 = vmatprep.subr.bf16.mxu0 %v4825_v0 }
 0x102   :  { %645 = vmatmul.mubr.bf16.vlgmr.msra.gmra.mrb[4].mxu1 %v324_v38  ;;  %v356_v38 = vpack.c.bf16 %v320_v35, %v316_v34  ;;  %v4734_v34 = vld [vmem:[%s6252_s13 + $0x90] sm:$0xff]   ;;  %v4735_v35 = vld [vmem:[%s6252_s13 + $0x58] sm:$0xff]  }
 0x103   :  { %718 = vmatpush1.bf16.msra.mxu1 %v4717_v39  ;;  %652 = vmatprep.mubr.bf16.mxu1 %v329_v40  ;;  %v327_v39 = vpack.c.bf16 %v259_v37, %v255_v36  ;;  %v254_v40 = vld [vmem:[%s6251_s1 + $0x10] sm:$0xff]  ;;  %v4736_v36 = vld [vmem:[%s6252_s13 + $0x98] sm:$0xff]   ;;  %v4737_v37 = vld [vmem:[%s6252_s13 + $0x60] sm:$0xff]  }
 0x104   :  { %719 = vmatprep.subr.bf16.mxu1 %v4828_v41 }
 0x107   :  { %720 = vmatpush1.bf16.msra.mxu1 %v4718_v42  ;;  %v263_v42 = vld [vmem:[%s6251_s1 + $0x58] sm:$0xff] }
 0x108   :  { %721 = vmatprep.subr.bf16.mxu1 %v4828_v41  ;;  %v331_v45 = vpack.c.bf16 %v267_v43, %v263_v42  ;;  %v5348_v42 = vld [vmem:[%s6252_s13 + $0xb0] sm:$0xff]   ;;  %v4743_v43 = vld [vmem:[%s6252_s13 + $0x78] sm:$0xff]  }
 0x10a   :  { %653 = vmatmul.mubr.bf16.gmra.mrb[8].mxu1 %v328_v47  ;;  %v266_v47 = vld [vmem:[%s6251_s1 + $0x70] sm:$0xff] }
 0x10b   :  { %722 = vmatpush1.bf16.msra.mxu1 %v4719_v48  ;;  %660 = vmatprep.mubr.bf16.mxu1 %v333_v49  ;;  %v271_v48 = vld [vmem:[%s6251_s1 + $0x98] sm:$0xff]  ;;  %v330_v50 = vpack.c.bf16 %v266_v47, %v262_v46 }
 0x10c   :  { %723 = vmatprep.subr.bf16.mxu1 %v4828_v41  ;;  %v275_v49 = vld [vmem:[%s6251_s1 + $0xb8] sm:$0xff] }
 0x10d   :  { %v335_v51 = vpack.c.bf16 %v275_v49, %v271_v48 }
 0x10f   :  { %724 = vmatpush1.bf16.msra.mxu1 %v4720_v52  ;;  %v270_v52 = vld [vmem:[%s6251_s1 + $0x90] sm:$0xff] }
 0x110   :  { %725 = vmatprep.subr.bf16.mxu1 %v4828_v41 }
 0x112   :  { %661 = vmatmul.mubr.bf16.gmra.mrb[12].mxu1 %v332_v55  ;;  %v283_v55 = vld [vmem:[%s6251_s1 + $0xf8] sm:$0xff] }
 0x113   :  { %668 = vmatprep.mubr.bf16.mxu1 %v337_v56  ;;  %726 = vmatpush1.bf16.msra.mxu1 %v4721_v57  ;;  %v334_v56 = vpack.c.bf16 %v274_v53, %v270_v52  ;;  %v339_v57 = vpack.c.bf16 %v283_v55, %v279_v54 }
 0x114   :  { %727 = vmatprep.subr.bf16.mxu1 %v4828_v41 }
 0x117   :  { %728 = vmatpush1.bf16.msra.mxu1 %v4722_v60  ;;  %v287_v60 = vld [vmem:[%s6251_s1 + $0x118] sm:$0xff] }
 0x118   :  { %729 = vmatprep.subr.bf16.mxu1 %v4828_v41 }
 0x11a   :  { %669 = vmatmul.mubr.bf16.gmra.mrb[16].mxu1 %v336_v63  ;;  %v343_v63 = vpack.c.bf16 %v291_v61, %v287_v60 }
 0x11b   :  { %676 = vmatprep.mubr.bf16.mxu1 %v341_v1  ;;  %730 = vmatpush1.bf16.msra.mxu1 %v4723_v2  ;;  %v286_v1 = vld [vmem:[%s6251_s1 + $0x110] sm:$0xff] }
 0x11c   :  { %731 = vmatprep.subr.bf16.mxu1 %v4828_v41  ;;  %v290_v2 = vld [vmem:[%s6251_s1 + $0x130] sm:$0xff] }
 0x11f   :  { %732 = vmatpush1.bf16.msra.mxu1 %v4724_v6  ;;  %v342_v6 = vpack.c.bf16 %v290_v2, %v286_v1 }
 0x120   :  { %733 = vmatprep.subr.bf16.mxu1 %v4828_v41 }
 0x122   :  { %677 = vmatmul.mubr.bf16.gmra.mrb[20].mxu1 %v340_v9  ;;  %v298_v9 = vld [vmem:[%s6251_s1 + $0x170] sm:$0xff] }
 0x123   :  { %684 = vmatprep.mubr.bf16.mxu1 %v345_v10  ;;  %734 = vmatpush1.bf16.msra.mxu1 %v4725_v11  ;;  %v303_v10 = vld [vmem:[%s6251_s1 + $0x198] sm:$0xff]  ;;  %v346_v12 = vpack.c.bf16 %v298_v9, %v294_v8 }
 0x124   :  { %735 = vmatprep.subr.bf16.mxu1 %v4828_v41  ;;  %v307_v11 = vld [vmem:[%s6251_s1 + $0x1b8] sm:$0xff] }
 0x125   :  { %v351_v13 = vpack.c.bf16 %v307_v11, %v303_v10 }
 0x127   :  { %736 = vmatpush1.bf16.msra.mxu1 %v4726_v14  ;;  %v302_v14 = vld [vmem:[%s6251_s1 + $0x190] sm:$0xff] }
 0x128   :  { %737 = vmatprep.subr.bf16.mxu1 %v4828_v41 }
 0x12a   :  { %685 = vmatmul.mubr.bf16.gmra.mrb[24].mxu1 %v344_v17  ;;  %v315_v17 = vld [vmem:[%s6251_s1 + $0x1f8] sm:$0xff] }
 0x12b   :  { %692 = vmatprep.mubr.bf16.mxu1 %v349_v18  ;;  %738 = vmatpush1.bf16.msra.mxu1 %v4727_v19  ;;  %v350_v18 = vpack.c.bf16 %v306_v15, %v302_v14  ;;  %v355_v19 = vpack.c.bf16 %v315_v17, %v311_v16 }
 0x12c   :  { %739 = vmatprep.subr.bf16.mxu1 %v4828_v41  ;;  %v258_v41 = vld [vmem:[%s6251_s1 + $0x30] sm:$0xff] }
 0x12d   :  { %v326_v44 = vpack.c.bf16 %v258_v41, %v254_v40  ;;  %v5337_v40 = vld [vmem:[%s6252_s13 + $0xa8] sm:$0xff]   ;;  %v4741_v41 = vld [vmem:[%s6252_s13 + $0x70] sm:$0xff]  }
 0x12f   :  { %740 = vmatpush1.bf16.msra.mxu1 %v610_v25  ;;  %v359_v25 = vpack.c.bf16 %v323_v23, %v319_v22 }
 0x130   :  { %3837 = vmatprep.subr.bf16.mxu1 %v4825_v0 }
 0x132   :  { %693 = vmatmul.mubr.bf16.gmra.mrb[28].mxu1 %v348_v26  ;;  %v318_v26 = vld [vmem:[%s6251_s1 + $0x210] sm:$0xff] }
 0x133   :  { %700 = vmatprep.mubr.bf16.mxu1 %v353_v27  ;;  %v322_v27 = vld [vmem:[%s6251_s1 + $0x230] sm:$0xff] }
 0x134   :  { %v358_v28 = vpack.c.bf16 %v322_v27, %v318_v26 }
 0x13a   :  { %701 = vmatmul.mubr.bf16.gmra.mrb[32].mxu1 %v352_v32  ;;  %v4732_v32 = vld [vmem:[%s6252_s13 + $0x88] sm:$0xff]  }
 0x13b   :  { %708 = vmatprep.mubr.bf16.mxu1 %v357_v33  ;;  %3944 = vmatpush3.bf16.msra.mxu0 %v4732_v32  ;;  %v4733_v33 = vld [vmem:[%s6252_s13 + $0x50] sm:$0xff]  }
 0x13c   :  { %3945 = vmatprep.subr.bf16.mxu0 %v4825_v0 }
 0x13f   :  { %3946 = vmatpush3.bf16.msra.mxu0 %v4734_v34 }
 0x140   :  { %3947 = vmatprep.subr.bf16.mxu0 %v4825_v0 }
 0x142   :  { %709 = vmatmul.mubr.bf16.gmra.mrb[36].mxu1 %v356_v38  ;;  %v4738_v38 = vld [vmem:[%s6252_s13 + $0xa0] sm:$0xff]  }
 0x143   :  { %3337 = vmatprep.mubr.msk.bf16.mxu1 %vm580_vm4, %v327_v39  ;;  %3948 = vmatpush3.bf16.msra.mxu0 %v4736_v36  ;;  %v4739_v39 = vld [vmem:[%s6252_s13 + $0x68] sm:$0xff]  }
 0x144   :  { %3949 = vmatprep.subr.bf16.mxu0 %v4825_v0 }
 0x147   :  { %3950 = vmatpush3.bf16.msra.mxu0 %v4738_v38 }
 0x148   :  { %3951 = vmatprep.subr.bf16.mxu0 %v4825_v0 }
 0x14a   :  { %750 = vmatmul.mubr.bf16.vlgmr.msra.gmra.mrb[40].mxu1 %v326_v44  ;;  %v5359_v44 = vld [vmem:[%s6252_s13 + $0xb8] sm:$0xff]  }
 0x14b   :  { %3338 = vmatprep.mubr.msk.bf16.mxu1 %vm580_vm4, %v331_v45  ;;  %3838 = vmatpush3.bf16.msra.mxu1 %v4729_v29 }
 0x14c   :  { %3839 = vmatprep.subr.bf16.mxu1 %v4825_v0  ;;  %3952 = vmatpush3.bf16.msra.mxu0 %v5337_v40 }
 0x14d   :  { %3953 = vmatprep.subr.bf16.mxu0 %v4825_v0 }
 0x14f   :  { %3840 = vmatpush3.bf16.msra.mxu1 %v4731_v31 }
 0x150   :  { %3841 = vmatprep.subr.bf16.mxu1 %v4825_v0  ;;  %3954 = vmatpush3.bf16.msra.mxu0 %v5348_v42 }
 0x151   :  { %3955 = vmatprep.subr.bf16.mxu0 %v4825_v0 }
 0x152   :  { %758 = vmatmul.mubr.bf16.gmra.mrb[44].mxu1 %v330_v50 }
 0x153   :  { %3339 = vmatprep.mubr.msk.bf16.mxu1 %vm580_vm4, %v335_v51  ;;  %3842 = vmatpush3.bf16.msra.mxu1 %v4733_v33 }
 0x154   :  { %3843 = vmatprep.subr.bf16.mxu1 %v4825_v0  ;;  %3956 = vmatpush3.bf16.msra.mxu0 %v5359_v44 }
 0x155   :  { %3993 = vmatprep.subr.bf16.mxu0 %v4825_v0 }
 0x157   :  { %3844 = vmatpush3.bf16.msra.mxu1 %v4735_v35 }
 0x158   :  { %3845 = vmatprep.subr.bf16.mxu1 %v4825_v0 }
 0x15a   :  { %766 = vmatmul.mubr.bf16.gmra.mrb[48].mxu1 %v334_v56 }
 0x15b   :  { %3340 = vmatprep.mubr.msk.bf16.mxu1 %vm580_vm4, %v339_v57  ;;  %3846 = vmatpush3.bf16.msra.mxu1 %v4737_v37 }
 0x15c   :  { %3847 = vmatprep.subr.bf16.mxu1 %v4825_v0 }
 0x15f   :  { %3848 = vmatpush3.bf16.msra.mxu1 %v4739_v39  ;;  %v5401_v39 = vld [vmem:[%s6253_s11] ss:$0 sm:$0xff] }
 0x160   :  { %3849 = vmatprep.subr.bf16.mxu1 %v4825_v0 }
 0x162   :  { %774 = vmatmul.mubr.bf16.gmra.mrb[52].mxu1 %v338_v62 }
 0x163   :  { %3341 = vmatprep.mubr.msk.bf16.mxu1 %vm580_vm4, %v343_v63  ;;  %3850 = vmatpush3.bf16.msra.mxu1 %v4741_v41 }
 0x164   :  { %3851 = vmatprep.subr.bf16.mxu1 %v4825_v0 }
 0x167   :  { %3852 = vmatpush3.bf16.msra.mxu1 %v4743_v43 }
 0x168   :  { %3889 = vmatprep.subr.bf16.mxu1 %v4825_v0 }
 0x16a   :  { %782 = vmatmul.mubr.bf16.gmra.mrb[56].mxu1 %v342_v6 }
 0x16b   :  { %3342 = vmatprep.mubr.msk.bf16.mxu1 %vm580_vm4, %v347_v7 }
 0x172   :  { %790 = vmatmul.mubr.bf16.gmra.mrb[60].mxu1 %v346_v12 }
 0x173   :  { %3343 = vmatprep.mubr.msk.bf16.mxu1 %vm580_vm4, %v351_v13 }
 0x17a   :  { %798 = vmatmul.mubr.bf16.gmra.mrb[64].mxu1 %v350_v18 }
 0x17b   :  { %3344 = vmatprep.mubr.msk.bf16.mxu1 %vm580_vm4, %v355_v19 }
 0x182   :  { %806 = vmatmul.mubr.bf16.gmra.mrb[68].mxu1 %v354_v24 }
 0x183   :  { %3345 = vmatprep.mubr.msk.bf16.mxu1 %vm580_vm4, %v359_v25 }
 0x18a   :  { %814 = vmatmul.mubr.bf16.gmra.mrb[72].mxu1 %v358_v28 }
 0x18b   :  { %3853 = vmatprep.mubr.msk.bf16.mxu1 %vm4826_vm1, %v4825_v0 }
 0x1b5   :  { %v5361_v45 = vpop.f32.mrb[2].mxu1 }
 0x1b6   :  { %v3836_v46 = vpop.f32.mrb[3].mxu1 }
 0x1b7   :  { %v5406_v46 = vld [vmem:[%s6254_s12] ss:$0 sm:$0xff] }
 0x1d5   :  { %v3594_v47 = vpop.f32.mrb[4].mxu1 }
 0x1d6   :  { %v3595_v48 = vpop.f32.mrb[5].mxu1 }
 0x1d7   :  { %v3596_v49 = vadd.f32 %v3595_v48, %v3594_v47  ;;  %v3597_v50 = vpop.f32.mrb[6].mxu1 }
 0x1d8   :  { %v3598_v51 = vpop.f32.mrb[7].mxu1 }
 0x1d9   :  { %v3599_v52 = vadd.f32 %v3598_v51, %v3597_v50 }
 0x1dd   :  { %v3600_v53 = vpop.f32.mrb[8].mxu1 }
 0x1de   :  { %v3601_v54 = vpop.f32.mrb[9].mxu1 }
 0x1df   :  { %v5366_v55 = vadd.f32 %v3601_v54, %v3600_v53  ;;  %v3603_v56 = vpop.f32.mrb[10].mxu1 }
 0x1e0   :  { %v3604_v57 = vpop.f32.mrb[11].mxu1 }
 0x1e1   :  { %v5368_v58 = vadd.f32 %v3604_v57, %v3603_v56 }
 0x1e5   :  { %v3606_v59 = vpop.f32.mrb[12].mxu1 }
 0x1e6   :  { %v3607_v60 = vpop.f32.mrb[13].mxu1 }
 0x1e7   :  { %v5370_v61 = vadd.f32 %v3607_v60, %v3606_v59  ;;  %v3609_v62 = vpop.f32.mrb[14].mxu1 }
 0x1e8   :  { %v3610_v0 = vpop.f32.mrb[15].mxu1 }
 0x1e9   :  { %v5372_v63 = vadd.f32 %v3610_v0, %v3609_v62 }
 0x1ed   :  { %v3612_v1 = vpop.f32.mrb[16].mxu1 }
 0x1ee   :  { %v3613_v2 = vpop.f32.mrb[17].mxu1 }
 0x1ef   :  { %v5374_v3 = vadd.f32 %v3613_v2, %v3612_v1  ;;  %v3615_v4 = vpop.f32.mrb[18].mxu1 }
 0x1f0   :  { %v3616_v6 = vpop.f32.mrb[19].mxu1 }
 0x1f1   :  { %v5376_v7 = vadd.f32 %v3616_v6, %v3615_v4 }
 0x1f5   :  { %v3618_v8 = vpop.f32.mrb[20].mxu1 }
 0x1f6   :  { %v3619_v9 = vpop.f32.mrb[21].mxu1 }
 0x1f7   :  { %v5378_v10 = vadd.f32 %v3619_v9, %v3618_v8  ;;  %v3621_v11 = vpop.f32.mrb[22].mxu1 }
 0x1f8   :  { %v3622_v12 = vpop.f32.mrb[23].mxu1 }
 0x1f9   :  { %v5380_v13 = vadd.f32 %v3622_v12, %v3621_v11 }
 0x1fd   :  { %v3624_v14 = vpop.f32.mrb[24].mxu1 }
 0x1fe   :  { %v3625_v15 = vpop.f32.mrb[25].mxu1 }
 0x1ff   :  { %v5382_v16 = vadd.f32 %v3625_v15, %v3624_v14  ;;  %v3627_v17 = vpop.f32.mrb[26].mxu1 }
 0x200   :  { %v3628_v18 = vpop.f32.mrb[27].mxu1 }
 0x201   :  { %v5384_v19 = vadd.f32 %v3628_v18, %v3627_v17 }
 0x205   :  { %v3630_v20 = vpop.f32.mrb[28].mxu1 }
 0x206   :  { %v3631_v21 = vpop.f32.mrb[29].mxu1 }
 0x207   :  { %v5386_v22 = vadd.f32 %v3631_v21, %v3630_v20  ;;  %v3633_v23 = vpop.f32.mrb[30].mxu1 }
 0x208   :  { %v3634_v24 = vpop.f32.mrb[31].mxu1 }
 0x209   :  { %v5388_v25 = vadd.f32 %v3634_v24, %v3633_v23 }
 0x20d   :  { %v3636_v26 = vpop.f32.mrb[32].mxu1 }
 0x20e   :  { %v3637_v27 = vpop.f32.mrb[33].mxu1 }
 0x20f   :  { %v5390_v28 = vadd.f32 %v3637_v27, %v3636_v26  ;;  %v3639_v29 = vpop.f32.mrb[34].mxu1 }
 0x210   :  { %v3640_v30 = vpop.f32.mrb[35].mxu1 }
 0x211   :  { %v5392_v31 = vadd.f32 %v3640_v30, %v3639_v29 }
 0x215   :  { %v3642_v32 = vpop.f32.mrb[36].mxu1 }
 0x216   :  { %v3643_v33 = vpop.f32.mrb[37].mxu1 }
 0x217   :  { %v5394_v34 = vadd.f32 %v3643_v33, %v3642_v32  ;;  %v3645_v35 = vpop.f32.mrb[38].mxu1 }
 0x218   :  { %v3646_v36 = vpop.f32.mrb[39].mxu1 }
 0x219   :  { %v5396_v37 = vadd.f32 %v3646_v36, %v3645_v35 }
 0x21d   :  { %v751_v38 = vpop.f32.mrb[40].mxu1 }
 0x21e   :  { %v752_v41 = vadd.f32 %v3596_v49, %v751_v38  ;;  %v753_v43 = vpop.f32.mrb[41].mxu1 }
 0x21f   :  { %v754_v47 = vpop.f32.mrb[42].mxu1 }
 0x220   :  { %v829_v48 = vmul.f32 %v5401_v39, %v752_v41  ;;  %v755_v50 = vadd.f32 %v3599_v52, %v754_v47  ;;  %v756_v51 = vpop.f32.mrb[43].mxu1 }
 0x222   :  { %v854_v53 = vadd.f32 %v5406_v46, %v829_v48  ;;  %v830_v54 = vmul.f32 %v5401_v39, %v755_v50  ;;  %v4754_v48 = vld [vmem:[%s6252_s13] sm:$0xff]  }
 0x224   :  { %v872_v56 = vmax.f32 %v854_v53, 0.0  ;;  %v855_v57 = vadd.f32 %v5406_v46, %v830_v54 }
 0x225   :  { %v759_v59 = vpop.f32.mrb[44].mxu1 }
 0x226   :  { %890 = vst [vmem:[#allocation2] sm:$0xff] %v872_v56  ;;  %v873_v49 = vmax.f32 %v855_v57, 0.0  ;;  %v760_v60 = vadd.f32 %v5366_v55, %v759_v59  ;;  %v761_v62 = vpop.f32.mrb[45].mxu1 }
 0x227   :  { %v762_v0 = vpop.f32.mrb[46].mxu1 }
 0x228   :  { %891 = vst [vmem:[#allocation2 + $0x8] sm:$0xff] %v873_v49  ;;  %v831_v1 = vmul.f32 %v5401_v39, %v760_v60  ;;  %v763_v52 = vadd.f32 %v5368_v58, %v762_v0  ;;  %v764_v2 = vpop.f32.mrb[47].mxu1  ;;  %v5415_v4 = vpack.c.bf16 %v873_v49, %v872_v56  ;;  %v5442_v56 = vld [vmem:[#allocation2 + $0x90] sm:$0xff] }
 0x229   :  { %v4747_v0 = vld [vmem:[%s6252_s13 + $0xd0] sm:$0xff]  }
 0x22a   :  { %v856_v6 = vadd.f32 %v5406_v46, %v831_v1  ;;  %v832_v8 = vmul.f32 %v5401_v39, %v763_v52 }
 0x22c   :  { %v874_v9 = vmax.f32 %v856_v6, 0.0  ;;  %v857_v11 = vadd.f32 %v5406_v46, %v832_v8 }
 0x22d   :  { %v767_v12 = vpop.f32.mrb[48].mxu1 }
 0x22e   :  { %892 = vst [vmem:[#allocation2 + $0x10] sm:$0xff] %v874_v9  ;;  %v875_v55 = vmax.f32 %v857_v11, 0.0  ;;  %v768_v14 = vadd.f32 %v5370_v61, %v767_v12  ;;  %v769_v15 = vpop.f32.mrb[49].mxu1  ;;  %v4745_v61 = vld [vmem:[%s6252_s13 + $0xc0] sm:$0xff]  }
 0x22f   :  { %v770_v17 = vpop.f32.mrb[50].mxu1  ;;  %v953_v29 = vld [vmem:[#allocation2 + $0x1] sm:$0xff] }
 0x230   :  { %893 = vst [vmem:[#allocation2 + $0x18] sm:$0xff] %v875_v55  ;;  %v833_v58 = vmul.f32 %v5401_v39, %v768_v14  ;;  %v771_v18 = vadd.f32 %v5372_v63, %v770_v17  ;;  %v772_v20 = vpop.f32.mrb[51].mxu1  ;;  %v5423_v21 = vpack.c.bf16 %v875_v55, %v874_v9  ;;  %v1303_v33 = vld [vmem:[#allocation2 + $0x2] sm:$0xff] }
 0x231   :  { %v4748_v20 = vld [vmem:[%s6252_s13 + $0xd8] sm:$0xff]  }
 0x232   :  { %v858_v23 = vadd.f32 %v5406_v46, %v833_v58  ;;  %v834_v24 = vmul.f32 %v5401_v39, %v771_v18 }
 0x234   :  { %v876_v26 = vmax.f32 %v858_v23, 0.0  ;;  %v859_v27 = vadd.f32 %v5406_v46, %v834_v24 }
 0x235   :  { %v775_v30 = vpop.f32.mrb[52].mxu1  ;;  %v954_v32 = vld [vmem:[#allocation2 + $0x9] sm:$0xff] }
 0x236   :  { %v1304_v35 = vld [vmem:[#allocation2 + $0xa] sm:$0xff]  ;;  %894 = vst [vmem:[#allocation2 + $0x20] sm:$0xff] %v876_v26  ;;  %v877_v63 = vmax.f32 %v859_v27, 0.0  ;;  %v776_v36 = vadd.f32 %v5374_v3, %v775_v30  ;;  %v777_v38 = vpop.f32.mrb[53].mxu1  ;;  %v971_v41 = vpack.c.bf16 %v954_v32, %v953_v29  ;;  %v4749_v29 = vld [vmem:[%s6252_s13 + $0xe0] sm:$0xff]  }
 0x237   :  { %v1321_v43 = vpack.c.bf16 %v1304_v35, %v1303_v33  ;;  %v778_v47 = vpop.f32.mrb[54].mxu1  ;;  %v4746_v3 = vld [vmem:[%s6252_s13 + $0xc8] sm:$0xff]   ;;  %v955_v62 = vld [vmem:[#allocation2 + $0x11] sm:$0xff] }
 0x238   :  { %895 = vst [vmem:[#allocation2 + $0x28] sm:$0xff] %v877_v63  ;;  %v835_v50 = vmul.f32 %v5401_v39, %v776_v36  ;;  %v779_v51 = vadd.f32 %v5376_v7, %v778_v47  ;;  %v780_v53 = vpop.f32.mrb[55].mxu1  ;;  %3854 = vmatmul.mubr.bf16.vlgmr.msra.gmra.mrb[76].mxu1 %v971_v41  ;;  %v5437_v54 = vpack.c.bf16 %v877_v63, %v876_v26  ;;  %v4756_v7 = vld [vmem:[%s6252_s13 + $0x8] sm:$0xff]   ;;  %v1305_v2 = vld [vmem:[#allocation2 + $0x12] sm:$0xff] }
 0x239   :  { %3958 = vmatmul.mubr.bf16.vlgmr.msra.gmra.mrb[0].mxu0 %v1321_v43  ;;  %3857 = vmatprep.mubr.msk.bf16.mxu1 %vm4826_vm1, %v5442_v56  ;;  %v4759_v47 = vld [vmem:[%s6252_s13 + $0x18] sm:$0xff]  }
 0x23a   :  { %3994 = vmatpush3.bf16.msra.mxu0 %v4745_v61  ;;  %v860_v57 = vadd.f32 %v5406_v46, %v835_v50  ;;  %v836_v59 = vmul.f32 %v5401_v39, %v779_v51  ;;  %3961 = vmatprep.mubr.msk.bf16.mxu0 %vm4826_vm1, %v5442_v56 }
 0x23b   :  { %3995 = vmatprep.subr.bf16.mxu0 %v5442_v56  ;;  %3890 = vmatpush3.bf16.msra.mxu1 %v4754_v48 }
 0x23c   :  { %v5454_v49 = vmax.f32 %v860_v57, 0.0  ;;  %v861_v60 = vadd.f32 %v5406_v46, %v836_v59  ;;  %3891 = vmatprep.subr.bf16.mxu1 %v5442_v56 }
 0x23d   :  { %v783_v1 = vpop.f32.mrb[56].mxu1  ;;  %v956_v52 = vld [vmem:[#allocation2 + $0x19] sm:$0xff] }
 0x23e   :  { %3996 = vmatpush3.bf16.msra.mxu0 %v4746_v3  ;;  %v1306_v6 = vld [vmem:[#allocation2 + $0x1a] sm:$0xff]  ;;  %896 = vst [vmem:[#allocation2 + $0x30] sm:$0xff] %v5454_v49  ;;  %v5462_v8 = vmax.f32 %v861_v60, 0.0  ;;  %v784_v9 = vadd.f32 %v5378_v10, %v783_v1  ;;  %v785_v11 = vpop.f32.mrb[57].mxu1  ;;  %v972_v12 = vpack.c.bf16 %v956_v52, %v955_v62  ;;  %v4757_v10 = vld [vmem:[%s6252_s13 + $0x10] sm:$0xff]   ;;  %v4750_v3 = vld [vmem:[%s6252_s13 + $0xe8] sm:$0xff]  }
 0x23f   :  { %v1322_v55 = vpack.c.bf16 %v1306_v6, %v1305_v2  ;;  %3997 = vmatprep.subr.bf16.mxu0 %v5442_v56  ;;  %v786_v14 = vpop.f32.mrb[58].mxu1  ;;  %3892 = vmatpush3.bf16.msra.mxu1 %v4756_v7  ;;  %v957_v27 = vld [vmem:[#allocation2 + $0x21] sm:$0xff] }
 0x240   :  { %897 = vst [vmem:[#allocation2 + $0x38] sm:$0xff] %v5462_v8  ;;  %v837_v15 = vmul.f32 %v5401_v39, %v784_v9  ;;  %v787_v17 = vadd.f32 %v5380_v13, %v786_v14  ;;  %v788_v58 = vpop.f32.mrb[59].mxu1  ;;  %3858 = vmatmul.mubr.bf16.gmra.mrb[80].mxu1 %v972_v12  ;;  %v931_v18 = vpack.c.bf16 %v5462_v8, %v5454_v49  ;;  %v1307_v32 = vld [vmem:[#allocation2 + $0x22] sm:$0xff] }
 0x241   :  { %3962 = vmatmul.mubr.bf16.gmra.mrb[4].mxu0 %v1322_v55  ;;  %3861 = vmatprep.mubr.msk.bf16.mxu1 %vm4826_vm1, %v5442_v56 }
 0x242   :  { %3998 = vmatpush3.bf16.msra.mxu0 %v4747_v0  ;;  %v862_v13 = vadd.f32 %v5406_v46, %v837_v15  ;;  %v838_v23 = vmul.f32 %v5401_v39, %v787_v17  ;;  %3965 = vmatprep.mubr.msk.bf16.mxu0 %vm4826_vm1, %v5442_v56  ;;  %v4751_v0 = vld [vmem:[%s6252_s13 + $0xf0] sm:$0xff]  }
 0x243   :  { %3999 = vmatprep.subr.bf16.mxu0 %v5442_v56  ;;  %3893 = vmatprep.subr.bf16.mxu1 %v5442_v56 }
 0x244   :  { %v5485_v24 = vmax.f32 %v862_v13, 0.0  ;;  %v863_v26 = vadd.f32 %v5406_v46, %v838_v23  ;;  %3894 = vmatpush3.bf16.msra.mxu1 %v4757_v10  ;;  %v4752_v23 = vld [vmem:[%s6252_s13 + $0xf8] sm:$0xff]  }
 0x245   :  { %v791_v61 = vpop.f32.mrb[60].mxu1  ;;  %v958_v30 = vld [vmem:[#allocation2 + $0x29] sm:$0xff]  ;;  %3895 = vmatprep.subr.bf16.mxu1 %v5442_v56 }
 0x246   :  { %4000 = vmatpush3.bf16.msra.mxu0 %v4748_v20  ;;  %v1308_v33 = vld [vmem:[#allocation2 + $0x2a] sm:$0xff]  ;;  %898 = vst [vmem:[#allocation2 + $0x40] sm:$0xff] %v5485_v24  ;;  %v5493_v35 = vmax.f32 %v863_v26, 0.0  ;;  %v792_v63 = vadd.f32 %v5382_v16, %v791_v61  ;;  %v793_v36 = vpop.f32.mrb[61].mxu1  ;;  %v973_v38 = vpack.c.bf16 %v958_v30, %v957_v27  ;;  %v1969_v48 = vpack.c.bf16 %v5485_v24, %v5462_v8  ;;  %v4753_v30 = vld [vmem:[%s6252_s13 + $0x100] sm:$0xff]  }
 0x247   :  { %v1323_v41 = vpack.c.bf16 %v1308_v33, %v1307_v32  ;;  %4001 = vmatprep.subr.bf16.mxu0 %v5442_v56  ;;  %v794_v43 = vpop.f32.mrb[62].mxu1  ;;  %v959_v62 = vld [vmem:[#allocation2 + $0x31] sm:$0xff]  ;;  %v1518_v36 = vld [vmem:[#allocation2 + $0x6] sm:$0xff] }
 0x248   :  { %899 = vst [vmem:[#allocation2 + $0x48] sm:$0xff] %v5493_v35  ;;  %v839_v50 = vmul.f32 %v5401_v39, %v792_v63  ;;  %v795_v51 = vadd.f32 %v5384_v19, %v794_v43  ;;  %3862 = vmatmul.mubr.bf16.gmra.mrb[84].mxu1 %v973_v38  ;;  %v796_v16 = vpop.f32.mrb[63].mxu1  ;;  %v932_v53 = vpack.c.bf16 %v5493_v35, %v5485_v24  ;;  %v4760_v19 = vld [vmem:[%s6252_s13 + $0x20] sm:$0xff]   ;;  %v1309_v2 = vld [vmem:[#allocation2 + $0x32] sm:$0xff] }
 0x249   :  { %3966 = vmatmul.mubr.bf16.gmra.mrb[8].mxu0 %v1323_v41  ;;  %3865 = vmatprep.mubr.msk.bf16.mxu1 %vm4826_vm1, %v5442_v56  ;;  %v1519_v27 = vld [vmem:[#allocation2 + $0xe] sm:$0xff] }
 0x24a   :  { %4002 = vmatpush3.bf16.msra.mxu0 %v4749_v29  ;;  %v864_v57 = vadd.f32 %v5406_v46, %v839_v50  ;;  %v840_v59 = vmul.f32 %v5401_v39, %v795_v51  ;;  %3969 = vmatprep.mubr.msk.bf16.mxu0 %vm4826_vm1, %v5442_v56  ;;  %v1536_v50 = vpack.c.bf16 %v1519_v27, %v1518_v36  ;;  %v4763_v16 = vld [vmem:[%s6252_s13 + $0x30] sm:$0xff]  }
 0x24b   :  { %4003 = vmatprep.subr.bf16.mxu0 %v5442_v56  ;;  %3896 = vmatpush3.bf16.msra.mxu1 %v4759_v47  ;;  %v2164_v24 = vld [vmem:[#allocation2 + $0x14] sm:$0xff] }
 0x24c   :  { %v5520_v7 = vmax.f32 %v864_v57, 0.0  ;;  %v865_v60 = vadd.f32 %v5406_v46, %v840_v59  ;;  %3897 = vmatprep.subr.bf16.mxu1 %v5442_v56 }
 0x24d   :  { %v799_v1 = vpop.f32.mrb[64].mxu1  ;;  %v960_v52 = vld [vmem:[#allocation2 + $0x39] sm:$0xff] }
 0x24e   :  { %4004 = vmatpush3.bf16.msra.mxu0 %v4750_v3  ;;  %v1310_v6 = vld [vmem:[#allocation2 + $0x3a] sm:$0xff]  ;;  %900 = vst [vmem:[#allocation2 + $0x50] sm:$0xff] %v5520_v7  ;;  %v5528_v9 = vmax.f32 %v865_v60, 0.0  ;;  %v800_v11 = vadd.f32 %v5386_v22, %v799_v1  ;;  %v801_v12 = vpop.f32.mrb[65].mxu1  ;;  %v974_v55 = vpack.c.bf16 %v960_v52, %v959_v62  ;;  %v1970_v17 = vpack.c.bf16 %v5520_v7, %v5493_v35  ;;  %v4762_v22 = vld [vmem:[%s6252_s13 + $0x28] sm:$0xff]  }
 0x24f   :  { %v1324_v14 = vpack.c.bf16 %v1310_v6, %v1309_v2  ;;  %4005 = vmatprep.subr.bf16.mxu0 %v5442_v56  ;;  %v802_v15 = vpop.f32.mrb[66].mxu1  ;;  %3898 = vmatpush3.bf16.msra.mxu1 %v4760_v19  ;;  %v961_v33 = vld [vmem:[#allocation2 + $0x41] sm:$0xff]  ;;  %v4764_v1 = vld [vmem:[%s6252_s13 + $0x38] sm:$0xff]   ;;  %v2163_v35 = vld [vmem:[#allocation2 + $0xc] sm:$0xff] }
 0x250   :  { %901 = vst [vmem:[#allocation2 + $0x58] sm:$0xff] %v5528_v9  ;;  %v841_v58 = vmul.f32 %v5401_v39, %v800_v11  ;;  %v803_v10 = vadd.f32 %v5388_v25, %v802_v15  ;;  %3866 = vmatmul.mubr.bf16.gmra.mrb[88].mxu1 %v974_v55  ;;  %v804_v20 = vpop.f32.mrb[67].mxu1  ;;  %v933_v13 = vpack.c.bf16 %v5528_v9, %v5520_v7  ;;  %v4755_v60 = vld [vmem:[%s6252_s13 + $0x108] sm:$0xff]   ;;  %v1520_v55 = vld [vmem:[#allocation2 + $0x16] sm:$0xff] }
 0x251   :  { %3970 = vmatmul.mubr.bf16.gmra.mrb[12].mxu0 %v1324_v14  ;;  %3869 = vmatprep.mubr.msk.bf16.mxu1 %vm4826_vm1, %v5442_v56  ;;  %v2181_v7 = vpack.c.bf16 %v2164_v24, %v2163_v35  ;;  %v4793_v24 = vld [vmem:[%s6252_s13 + $0x200] sm:$0xff]  }
 0x252   :  { %4006 = vmatpush3.bf16.msra.mxu0 %v4751_v0  ;;  %v866_v25 = vadd.f32 %v5406_v46, %v841_v58  ;;  %v842_v26 = vmul.f32 %v5401_v39, %v803_v10  ;;  %4009 = vmatprep.mubr.msk.bf16.mxu0 %vm4826_vm1, %v5442_v56 }
 0x253   :  { %4007 = vmatprep.subr.bf16.mxu0 %v5442_v56  ;;  %3899 = vmatprep.subr.bf16.mxu1 %v5442_v56 }
 0x254   :  { %v5553_v29 = vmax.f32 %v866_v25, 0.0  ;;  %v867_v61 = vadd.f32 %v5406_v46, %v842_v26  ;;  %3900 = vmatpush3.bf16.msra.mxu1 %v4762_v22  ;;  %v4758_v22 = vld [vmem:[%s6252_s13 + $0x110] sm:$0xff]  }
 0x255   :  { %v807_v32 = vpop.f32.mrb[68].mxu1  ;;  %v962_v63 = vld [vmem:[#allocation2 + $0x49] sm:$0xff]  ;;  %3901 = vmatprep.subr.bf16.mxu1 %v5442_v56 }
 0x256   :  { %4008 = vmatpush3.bf16.msra.mxu0 %v4752_v23  ;;  %902 = vst [vmem:[#allocation2 + $0x60] sm:$0xff] %v5553_v29  ;;  %v5561_v38 = vmax.f32 %v867_v61, 0.0  ;;  %v808_v41 = vadd.f32 %v5390_v28, %v807_v32  ;;  %v809_v43 = vpop.f32.mrb[69].mxu1  ;;  %v975_v47 = vpack.c.bf16 %v962_v63, %v961_v33  ;;  %v1971_v3 = vpack.c.bf16 %v5553_v29, %v5528_v9  ;;  %v1523_v33 = vld [vmem:[#allocation2 + $0x2e] sm:$0xff] }
 0x257   :  { %4045 = vmatprep.subr.bf16.mxu0 %v5442_v56  ;;  %v810_v51 = vpop.f32.mrb[70].mxu1  ;;  %v963_v11 = vld [vmem:[#allocation2 + $0x51] sm:$0xff]  ;;  %v4786_v9 = vld [vmem:[%s6252_s13 + $0x1c8] sm:$0xff]  }
 0x258   :  { %903 = vst [vmem:[#allocation2 + $0x68] sm:$0xff] %v5561_v38  ;;  %v843_v57 = vmul.f32 %v5401_v39, %v808_v41  ;;  %v811_v59 = vadd.f32 %v5392_v31, %v810_v51  ;;  %3870 = vmatmul.mubr.bf16.gmra.mrb[92].mxu1 %v975_v47  ;;  %v812_v28 = vpop.f32.mrb[71].mxu1  ;;  %v934_v19 = vpack.c.bf16 %v5561_v38, %v5553_v29  ;;  %v1521_v31 = vld [vmem:[#allocation2 + $0x1e] sm:$0xff]  ;;  %v1522_v47 = vld [vmem:[#allocation2 + $0x26] sm:$0xff] }
 0x259   :  { %4010 = vmatmul.mubr.bf16.vlgmr.msra.gmra.mrb[0].mxu0 %v1536_v50  ;;  %3873 = vmatprep.mubr.msk.bf16.mxu1 %vm4826_vm1, %v5442_v56  ;;  %v1537_v20 = vpack.c.bf16 %v1521_v31, %v1520_v55  ;;  %v1538_v51 = vpack.c.bf16 %v1523_v33, %v1522_v47  ;;  %v4819_v33 = vld [vmem:[%s6252_s13 + $0x80] sm:$0xff]  }
 0x25a   :  { %4046 = vmatpush3.bf16.msra.mxu0 %v4753_v30  ;;  %v868_v62 = vadd.f32 %v5406_v46, %v843_v57  ;;  %v844_v0 = vmul.f32 %v5401_v39, %v811_v59  ;;  %4013 = vmatprep.mubr.msk.bf16.mxu0 %vm4826_vm1, %v5442_v56  ;;  %v2165_v29 = vld [vmem:[#allocation2 + $0x1c] sm:$0xff] }
 0x25b   :  { %4047 = vmatprep.subr.bf16.mxu0 %v5442_v56  ;;  %3902 = vmatpush3.bf16.msra.mxu1 %v4763_v16  ;;  %v4765_v16 = vld [vmem:[%s6252_s13 + $0x120] sm:$0xff]  }
 0x25c   :  { %v5588_v52 = vmax.f32 %v868_v62, 0.0  ;;  %v869_v2 = vadd.f32 %v5406_v46, %v844_v0  ;;  %3903 = vmatprep.subr.bf16.mxu1 %v5442_v56  ;;  %v4766_v62 = vld [vmem:[%s6252_s13 + $0x128] sm:$0xff]   ;;  %v1525_v0 = vld [vmem:[#allocation2 + $0x3e] sm:$0xff] }
 0x25d   :  { %v815_v6 = vpop.f32.mrb[72].mxu1  ;;  %v964_v12 = vld [vmem:[#allocation2 + $0x59] sm:$0xff] }
 0x25e   :  { %4048 = vmatpush3.bf16.msra.mxu0 %v4755_v60  ;;  %904 = vst [vmem:[#allocation2 + $0x70] sm:$0xff] %v5588_v52  ;;  %v5593_v14 = vmax.f32 %v869_v2, 0.0  ;;  %v816_v15 = vadd.f32 %v5394_v34, %v815_v6  ;;  %v817_v58 = vpop.f32.mrb[73].mxu1  ;;  %v976_v10 = vpack.c.bf16 %v964_v12, %v963_v11  ;;  %v1972_v25 = vpack.c.bf16 %v5588_v52, %v5561_v38  ;;  %v1524_v2 = vld [vmem:[#allocation2 + $0x36] sm:$0xff] }
 0x25f   :  { %4049 = vmatprep.subr.bf16.mxu0 %v5442_v56  ;;  %v818_v23 = vpop.f32.mrb[74].mxu1  ;;  %3904 = vmatpush3.bf16.msra.mxu1 %v4764_v1  ;;  %v965_v41 = vld [vmem:[#allocation2 + $0x61] sm:$0xff]  ;;  %v1539_v11 = vpack.c.bf16 %v1525_v0, %v1524_v2  ;;  %v4767_v12 = vld [vmem:[%s6252_s13 + $0x130] sm:$0xff]  }
 0x260   :  { %905 = vst [vmem:[#allocation2 + $0x78] sm:$0xff] %v5593_v14  ;;  %v845_v26 = vmul.f32 %v5401_v39, %v816_v15  ;;  %v819_v34 = vadd.f32 %v5396_v37, %v818_v23  ;;  %3874 = vmatmul.mubr.bf16.gmra.mrb[96].mxu1 %v976_v10  ;;  %v820_v27 = vpop.f32.mrb[75].mxu1  ;;  %v935_v61 = vpack.c.bf16 %v5593_v14, %v5588_v52  ;;  %v4761_v37 = vld [vmem:[%s6252_s13 + $0x118] sm:$0xff]   ;;  %v1527_v23 = vld [vmem:[#allocation2 + $0x4e] sm:$0xff] }
 0x261   :  { %4014 = vmatmul.mubr.bf16.gmra.mrb[4].mxu0 %v1537_v20  ;;  %3877 = vmatprep.mubr.msk.bf16.mxu1 %vm4826_vm1, %v5442_v56  ;;  %v4768_v10 = vld [vmem:[%s6252_s13 + $0x138] sm:$0xff]   ;;  %v1738_v2 = vld [vmem:[#allocation2 + $0x2f] sm:$0xff] }
 0x262   :  { %4017 = vmatprep.mubr.msk.bf16.mxu0 %vm4826_vm1, %v5442_v56  ;;  %v870_v30 = vadd.f32 %v5406_v46, %v845_v26  ;;  %v846_v32 = vmul.f32 %v5401_v39, %v819_v34  ;;  %4050 = vmatpush3.bf16.msra.mxu0 %v4758_v22  ;;  %v1526_v26 = vld [vmem:[#allocation2 + $0x46] sm:$0xff]  ;;  %v4787_v38 = vld [vmem:[%s6252_s13 + $0x1d0] sm:$0xff]   ;;  %v4788_v52 = vld [vmem:[%s6252_s13 + $0x1d8] sm:$0xff]  }
 0x263   :  { %4411 = vmatprep.subr.bf16.mxu1 %v5442_v56  ;;  %4051 = vmatprep.subr.bf16.mxu0 %v5442_v56  ;;  %v1540_v27 = vpack.c.bf16 %v1527_v23, %v1526_v26  ;;  %v4776_v23 = vld [vmem:[%s6252_s13 + $0x178] sm:$0xff]   ;;  %v1742_v26 = vld [vmem:[#allocation2 + $0x4f] sm:$0xff] }
 0x264   :  { %v5618_v63 = vmax.f32 %v870_v30, 0.0  ;;  %v871_v36 = vadd.f32 %v5406_v46, %v846_v32  ;;  %v1529_v30 = vld [vmem:[#allocation2 + $0x5e] sm:$0xff]  ;;  %v1528_v32 = vld [vmem:[#allocation2 + $0x56] sm:$0xff] }
 0x265   :  { %v966_v43 = vld [vmem:[#allocation2 + $0x69] sm:$0xff] }
 0x266   :  { %906 = vst [vmem:[#allocation2 + $0x80] sm:$0xff] %v5618_v63  ;;  %v5622_v39 = vmax.f32 %v871_v36, 0.0  ;;  %v977_v50 = vpack.c.bf16 %v966_v43, %v965_v41  ;;  %4052 = vmatpush3.bf16.msra.mxu0 %v4761_v37  ;;  %v5628_v57 = vld [vmem:[#allocation2 + $0x6e] sm:$0xff]  ;;  %v1973_v46 = vpack.c.bf16 %v5618_v63, %v5593_v14  ;;  %v1541_v37 = vpack.c.bf16 %v1529_v30, %v1528_v32  ;;  %v5679_v36 = vld [vmem:[#allocation2 + $0x66] sm:$0xff] }
 0x267   :  { %4053 = vmatprep.subr.bf16.mxu0 %v5442_v56  ;;  %v5630_v59 = vld [vmem:[#allocation2 + $0x76] sm:$0xff]  ;;  %v1542_v41 = vpack.c.bf16 %v5628_v57, %v5679_v36  ;;  %v1744_v30 = vld [vmem:[#allocation2 + $0x5f] sm:$0xff] }
 0x268   :  { %907 = vst [vmem:[#allocation2 + $0x88] sm:$0xff] %v5622_v39  ;;  %3878 = vmatmul.mubr.bf16.gmra.mrb[100].mxu1 %v977_v50  ;;  %v936_v28 = vpack.c.bf16 %v5622_v39, %v5618_v63  ;;  %v2617_v60 = vpack.c.bf16 %v5630_v59, %v5628_v57  ;;  %v967_v31 = vld [vmem:[#allocation2 + $0x71] sm:$0xff]  ;;  %v4823_v50 = vld [vmem:[%s6252_s13 + $0xa0] sm:$0xff]   ;;  %v1974_v8 = vpack.c.bf16 %v5442_v56, %v5622_v39  ;;  %v2877_v57 = vld [vmem:[%s6255_s2 + $0x8] sm:$0xff] }
 0x269   :  { %4018 = vmatmul.mubr.bf16.gmra.mrb[8].mxu0 %v1538_v51  ;;  %3881 = vmatprep.mubr.msk.bf16.mxu1 %vm4826_vm1, %v5442_v56  ;;  %v4821_v43 = vld [vmem:[%s6252_s13 + $0x90] sm:$0xff]   ;;  %v1311_v32 = vld [vmem:[#allocation2 + $0x42] sm:$0xff] }
 0x26a   :  { %4021 = vmatprep.mubr.msk.bf16.mxu0 %vm4826_vm1, %v5442_v56  ;;  %4054 = vmatpush3.bf16.msra.mxu0 %v4765_v16  ;;  %v2168_v14 = vld [vmem:[#allocation2 + $0x34] sm:$0xff]  ;;  %v4789_v63 = vld [vmem:[%s6252_s13 + $0x1e0] sm:$0xff]  }
 0x26b   :  { %4055 = vmatprep.subr.bf16.mxu0 %v5442_v56 }
 0x26d   :  { %v968_v1 = vld [vmem:[#allocation2 + $0x79] sm:$0xff] }
 0x26e   :  { %v978_v6 = vpack.c.bf16 %v968_v1, %v967_v31  ;;  %4056 = vmatpush3.bf16.msra.mxu0 %v4766_v62  ;;  %v5651_v55 = vld [vmem:[#allocation2 + $0x7e] sm:$0xff]  ;;  %v1733_v62 = vld [vmem:[#allocation2 + $0x7] sm:$0xff] }
 0x26f   :  { %4057 = vmatprep.subr.bf16.mxu0 %v5442_v56  ;;  %v5653_v15 = vld [vmem:[#allocation2 + $0x86] sm:$0xff]  ;;  %v1543_v47 = vpack.c.bf16 %v5651_v55, %v5630_v59  ;;  %v5710_v51 = vld [vmem:[#allocation2 + $0x8e] sm:$0xff]  ;;  %v4772_v1 = vld [vmem:[%s6252_s13 + $0x158] sm:$0xff]  }
 0x270   :  { %3882 = vmatmul.mubr.bf16.gmra.mrb[104].mxu1 %v978_v6  ;;  %v2618_v58 = vpack.c.bf16 %v5653_v15, %v5651_v55  ;;  %v969_v20 = vld [vmem:[#allocation2 + $0x81] sm:$0xff]  ;;  %v970_v22 = vld [vmem:[#allocation2 + $0x89] sm:$0xff]  ;;  %v1544_v16 = vpack.c.bf16 %v5710_v51, %v5653_v15 }
 0x271   :  { %4022 = vmatmul.mubr.bf16.gmra.mrb[12].mxu0 %v1539_v11  ;;  %3885 = vmatprep.mubr.msk.bf16.mxu1 %vm4826_vm1, %v5442_v56  ;;  %v979_v34 = vpack.c.bf16 %v970_v22, %v969_v20  ;;  %v1737_v6 = vld [vmem:[#allocation2 + $0x27] sm:$0xff]  ;;  %v1739_v20 = vld [vmem:[#allocation2 + $0x37] sm:$0xff] }
 0x272   :  { %4025 = vmatprep.mubr.msk.bf16.mxu0 %vm4826_vm1, %v5442_v56  ;;  %4058 = vmatpush3.bf16.msra.mxu0 %v4767_v12  ;;  %v1753_v11 = vpack.c.bf16 %v1738_v2, %v1737_v6  ;;  %v4774_v12 = vld [vmem:[%s6252_s13 + $0x168] sm:$0xff]  }
 0x273   :  { %4059 = vmatprep.subr.bf16.mxu0 %v5442_v56  ;;  %v1319_v6 = vld [vmem:[#allocation2 + $0x82] sm:$0xff] }
 0x276   :  { %4060 = vmatpush3.bf16.msra.mxu0 %v4768_v10  ;;  %v1740_v10 = vld [vmem:[#allocation2 + $0x3f] sm:$0xff] }
 0x277   :  { %4097 = vmatprep.subr.bf16.mxu0 %v5442_v56  ;;  %v1754_v22 = vpack.c.bf16 %v1740_v10, %v1739_v20  ;;  %v4777_v10 = vld [vmem:[%s6252_s13 + $0x180] sm:$0xff]  }
 0x278   :  { %3886 = vmatmul.mubr.bf16.gmra.mrb[108].mxu1 %v979_v34  ;;  %v1741_v34 = vld [vmem:[#allocation2 + $0x47] sm:$0xff] }
 0x279   :  { %4026 = vmatmul.mubr.bf16.gmra.mrb[16].mxu0 %v1540_v27  ;;  %3905 = vmatprep.mubr.msk.bf16.mxu1 %vm4826_vm1, %v5442_v56  ;;  %v1755_v27 = vpack.c.bf16 %v1742_v26, %v1741_v34  ;;  %v1950_v26 = vld [vmem:[#allocation2 + $0x18] sm:$0xff]  ;;  %v4779_v34 = vld [vmem:[%s6252_s13 + $0x190] sm:$0xff]  }
 0x27a   :  { %4029 = vmatprep.mubr.msk.bf16.mxu0 %vm4826_vm1, %v5442_v56 }
 0x280   :  { %3906 = vmatmul.mubr.bf16.vlgmr.msra.gmra.mrb[76].mxu1 %v5415_v4  ;;  %v4820_v4 = vld [vmem:[%s6252_s13 + $0x88] sm:$0xff]  }
 0x281   :  { %4030 = vmatmul.mubr.bf16.gmra.mrb[20].mxu0 %v1541_v37  ;;  %3909 = vmatprep.mubr.msk.bf16.mxu1 %vm4826_vm1, %v5442_v56  ;;  %v1743_v37 = vld [vmem:[#allocation2 + $0x57] sm:$0xff] }
 0x282   :  { %4033 = vmatprep.mubr.msk.bf16.mxu0 %vm4826_vm1, %v5442_v56  ;;  %4419 = vmatpush3.bf16.msra.mxu1 %v4819_v33 }
 0x283   :  { %4412 = vmatprep.subr.bf16.mxu1 %v5442_v56 }
 0x286   :  { %4420 = vmatpush3.bf16.msra.mxu1 %v4820_v4  ;;  %v1746_v4 = vld [vmem:[#allocation2 + $0x6f] sm:$0xff] }
 0x287   :  { %4413 = vmatprep.subr.bf16.mxu1 %v5442_v56 }
 0x288   :  { %3910 = vmatmul.mubr.bf16.gmra.mrb[80].mxu1 %v5423_v21  ;;  %v4822_v21 = vld [vmem:[%s6252_s13 + $0x98] sm:$0xff]  }
 0x289   :  { %4034 = vmatmul.mubr.bf16.gmra.mrb[24].mxu0 %v1542_v41  ;;  %3913 = vmatprep.mubr.msk.bf16.mxu1 %vm4826_vm1, %v5442_v56  ;;  %v1756_v41 = vpack.c.bf16 %v1744_v30, %v1743_v37  ;;  %v1952_v30 = vld [vmem:[#allocation2 + $0x28] sm:$0xff] }
 0x28a   :  { %4037 = vmatprep.mubr.msk.bf16.mxu0 %vm4826_vm1, %v5442_v56  ;;  %4421 = vmatpush3.bf16.msra.mxu1 %v4821_v43  ;;  %v1313_v43 = vld [vmem:[#allocation2 + $0x52] sm:$0xff]  ;;  %v1968_v37 = vpack.c.bf16 %v5454_v49, %v1952_v30 }
 0x28b   :  { %4414 = vmatprep.subr.bf16.mxu1 %v5442_v56  ;;  %v4784_v49 = vld [vmem:[%s6252_s13 + $0x1b8] sm:$0xff]   ;;  %v2179_v30 = vld [vmem:[#allocation2 + $0x8c] sm:$0xff] }
 0x28e   :  { %4422 = vmatpush3.bf16.msra.mxu1 %v4822_v21 }
 0x28f   :  { %4415 = vmatprep.subr.bf16.mxu1 %v5442_v56 }
 0x290   :  { %3914 = vmatmul.mubr.bf16.gmra.mrb[84].mxu1 %v5437_v54  ;;  %v1734_v54 = vld [vmem:[#allocation2 + $0xf] sm:$0xff] }
 0x291   :  { %4038 = vmatmul.mubr.bf16.gmra.mrb[28].mxu0 %v1543_v47  ;;  %3917 = vmatprep.mubr.msk.bf16.mxu1 %vm4826_vm1, %v5442_v56  ;;  %v1751_v0 = vpack.c.bf16 %v1734_v54, %v1733_v62  ;;  %v1745_v47 = vld [vmem:[#allocation2 + $0x67] sm:$0xff]  ;;  %v1748_v54 = vld [vmem:[#allocation2 + $0x7f] sm:$0xff] }
 0x292   :  { %4041 = vmatprep.mubr.msk.bf16.mxu0 %vm4826_vm1, %v5442_v56  ;;  %4423 = vmatpush3.bf16.msra.mxu1 %v4823_v50  ;;  %v1757_v50 = vpack.c.bf16 %v1746_v4, %v1745_v47  ;;  %v1315_v62 = vld [vmem:[#allocation2 + $0x62] sm:$0xff] }
 0x293   :  { %4416 = vmatprep.subr.bf16.mxu1 %v5442_v56  ;;  %v2169_v4 = vld [vmem:[#allocation2 + $0x3c] sm:$0xff] }
 0x296   :  { %4424 = vmatpush3.bf16.msra.mxu1 %v5337_v40  ;;  %v4769_v40 = vld [vmem:[%s6252_s13 + $0x140] sm:$0xff]  }
 0x297   :  { %4417 = vmatprep.subr.bf16.mxu1 %v5442_v56 }
 0x298   :  { %3918 = vmatmul.mubr.bf16.gmra.mrb[88].mxu1 %v931_v18  ;;  %v1735_v18 = vld [vmem:[#allocation2 + $0x17] sm:$0xff] }
 0x299   :  { %4042 = vmatmul.mubr.bf16.gmra.mrb[32].mxu0 %v1544_v16  ;;  %3921 = vmatprep.mubr.msk.bf16.mxu1 %vm4826_vm1, %v5442_v56  ;;  %v1316_v16 = vld [vmem:[#allocation2 + $0x6a] sm:$0xff] }
 0x29a   :  { %4061 = vmatprep.mubr.msk.bf16.mxu0 %vm4826_vm1, %v5442_v56  ;;  %4425 = vmatpush3.bf16.msra.mxu1 %v5348_v42  ;;  %v4770_v42 = vld [vmem:[%s6252_s13 + $0x148] sm:$0xff]  }
 0x29b   :  { %4418 = vmatprep.subr.bf16.mxu1 %v5442_v56 }
 0x29e   :  { %4426 = vmatpush3.bf16.msra.mxu1 %v5359_v44  ;;  %v1736_v44 = vld [vmem:[#allocation2 + $0x1f] sm:$0xff] }
 0x29f   :  { %4357 = vmatprep.subr.bf16.mxu1 %v4827_v5  ;;  %v1752_v31 = vpack.c.bf16 %v1736_v44, %v1735_v18  ;;  %v1318_v44 = vld [vmem:[#allocation2 + $0x7a] sm:$0xff]  ;;  %v1749_v18 = vld [vmem:[#allocation2 + $0x87] sm:$0xff] }
 0x2a0   :  { %3922 = vmatmul.mubr.bf16.gmra.mrb[92].mxu1 %v932_v53  ;;  %v4771_v53 = vld [vmem:[%s6252_s13 + $0x150] sm:$0xff]  }
 0x2a1   :  { %4062 = vmatmul.mubr.bf16.vlgmr.msra.gmra.mrb[0].mxu0 %v1751_v0  ;;  %3925 = vmatprep.mubr.msk.bf16.mxu1 %vm4826_vm1, %v5442_v56  ;;  %v1327_v0 = vpack.c.bf16 %v1316_v16, %v1315_v62  ;;  %v2171_v16 = vld [vmem:[#allocation2 + $0x4c] sm:$0xff] }
 0x2a2   :  { %4098 = vmatpush3.bf16.msra.mxu0 %v4769_v40  ;;  %4065 = vmatprep.mubr.msk.bf16.mxu0 %vm4826_vm1, %v5442_v56  ;;  %v1747_v40 = vld [vmem:[#allocation2 + $0x77] sm:$0xff] }
 0x2a3   :  { %4099 = vmatprep.subr.bf16.mxu0 %v5442_v56 }
 0x2a6   :  { %4100 = vmatpush3.bf16.msra.mxu0 %v4770_v42  ;;  %v1758_v42 = vpack.c.bf16 %v1748_v54, %v1747_v40  ;;  %v2174_v40 = vld [vmem:[#allocation2 + $0x64] sm:$0xff] }
 0x2a7   :  { %4101 = vmatprep.subr.bf16.mxu0 %v5442_v56 }
 0x2a8   :  { %3926 = vmatmul.mubr.bf16.gmra.mrb[96].mxu1 %v933_v13  ;;  %v4773_v13 = vld [vmem:[%s6252_s13 + $0x160] sm:$0xff]  }
 0x2a9   :  { %4066 = vmatmul.mubr.bf16.gmra.mrb[4].mxu0 %v1752_v31  ;;  %3929 = vmatprep.mubr.msk.bf16.mxu1 %vm4826_vm1, %v5442_v56  ;;  %v1750_v31 = vld [vmem:[#allocation2 + $0x8f] sm:$0xff] }
 0x2aa   :  { %4069 = vmatprep.mubr.msk.bf16.mxu0 %vm4826_vm1, %v5442_v56  ;;  %4102 = vmatpush3.bf16.msra.mxu0 %v4771_v53  ;;  %v1317_v53 = vld [vmem:[#allocation2 + $0x72] sm:$0xff]  ;;  %v1759_v2 = vpack.c.bf16 %v1750_v31, %v1749_v18 }
 0x2ab   :  { %4103 = vmatprep.subr.bf16.mxu0 %v5442_v56 }
 0x2ae   :  { %4104 = vmatpush3.bf16.msra.mxu0 %v4772_v1  ;;  %v1328_v1 = vpack.c.bf16 %v1318_v44, %v1317_v53  ;;  %v2173_v44 = vld [vmem:[#allocation2 + $0x5c] sm:$0xff] }
 0x2af   :  { %4105 = vmatprep.subr.bf16.mxu0 %v5442_v56  ;;  %v2186_v31 = vpack.c.bf16 %v2174_v40, %v2173_v44  ;;  %v2388_v44 = vld [vmem:[#allocation2 + $0x5d] sm:$0xff] }
 0x2b0   :  { %3930 = vmatmul.mubr.bf16.gmra.mrb[100].mxu1 %v934_v19  ;;  %v4775_v19 = vld [vmem:[%s6252_s13 + $0x170] sm:$0xff]  }
 0x2b1   :  { %4070 = vmatmul.mubr.bf16.gmra.mrb[8].mxu0 %v1753_v11  ;;  %3933 = vmatprep.mubr.msk.bf16.mxu1 %vm4826_vm1, %v5442_v56  ;;  %v1320_v11 = vld [vmem:[#allocation2 + $0x8a] sm:$0xff] }
 0x2b2   :  { %4073 = vmatprep.mubr.msk.bf16.mxu0 %vm4826_vm1, %v5442_v56  ;;  %4106 = vmatpush3.bf16.msra.mxu0 %v4773_v13  ;;  %v1949_v13 = vld [vmem:[#allocation2 + $0x10] sm:$0xff]  ;;  %v1329_v20 = vpack.c.bf16 %v1320_v11, %v1319_v6 }
 0x2b3   :  { %4107 = vmatprep.subr.bf16.mxu0 %v5442_v56  ;;  %v2175_v11 = vld [vmem:[#allocation2 + $0x6c] sm:$0xff] }
 0x2b6   :  { %4108 = vmatpush3.bf16.msra.mxu0 %v4774_v12  ;;  %v1948_v12 = vld [vmem:[#allocation2 + $0x8] sm:$0xff] }
 0x2b7   :  { %4109 = vmatprep.subr.bf16.mxu0 %v5442_v56 }
 0x2b8   :  { %3934 = vmatmul.mubr.bf16.gmra.mrb[104].mxu1 %v935_v61  ;;  %v1312_v61 = vld [vmem:[#allocation2 + $0x4a] sm:$0xff] }
 0x2b9   :  { %4074 = vmatmul.mubr.bf16.gmra.mrb[12].mxu0 %v1754_v22  ;;  %3937 = vmatprep.mubr.msk.bf16.mxu1 %vm4826_vm1, %v5442_v56  ;;  %v1325_v33 = vpack.c.bf16 %v1312_v61, %v1311_v32  ;;  %v1966_v22 = vpack.c.bf16 %v1949_v13, %v1948_v12  ;;  %v4780_v61 = vld [vmem:[%s6252_s13 + $0x198] sm:$0xff]   ;;  %v4781_v32 = vld [vmem:[%s6252_s13 + $0x1a0] sm:$0xff]  }
 0x2ba   :  { %4077 = vmatprep.mubr.msk.bf16.mxu0 %vm4826_vm1, %v5442_v56  ;;  %4110 = vmatpush3.bf16.msra.mxu0 %v4775_v19  ;;  %v4778_v19 = vld [vmem:[%s6252_s13 + $0x188] sm:$0xff]  }
 0x2bb   :  { %4111 = vmatprep.subr.bf16.mxu0 %v5442_v56 }
 0x2be   :  { %4112 = vmatpush3.bf16.msra.mxu0 %v4776_v23  ;;  %v1951_v23 = vld [vmem:[#allocation2 + $0x20] sm:$0xff] }
 0x2bf   :  { %4149 = vmatprep.subr.bf16.mxu0 %v5442_v56 }
 0x2c0   :  { %3938 = vmatmul.mubr.bf16.gmra.mrb[108].mxu1 %v936_v28  ;;  %v1314_v28 = vld [vmem:[#allocation2 + $0x5a] sm:$0xff] }
 0x2c1   :  { %4078 = vmatmul.mubr.bf16.gmra.mrb[16].mxu0 %v1755_v27  ;;  %3973 = vmatprep.mubr.msk.bf16.mxu1 %vm4826_vm1, %v5442_v56  ;;  %v1326_v21 = vpack.c.bf16 %v1314_v28, %v1313_v43  ;;  %v1967_v27 = vpack.c.bf16 %v1951_v23, %v1950_v26  ;;  %v2170_v28 = vld [vmem:[#allocation2 + $0x44] sm:$0xff]  ;;  %v4791_v43 = vld [vmem:[%s6252_s13 + $0x1f0] sm:$0xff]   ;;  %v2177_v23 = vld [vmem:[#allocation2 + $0x7c] sm:$0xff] }
 0x2c2   :  { %4081 = vmatprep.mubr.msk.bf16.mxu0 %vm4826_vm1, %v5442_v56  ;;  %v2184_v47 = vpack.c.bf16 %v2170_v28, %v2169_v4  ;;  %v4799_v28 = vld [vmem:[%s6252_s13 + $0x230] sm:$0xff]  }
 0x2c8   :  { %3974 = vmatmul.mubr.bf16.vlgmr.msra.gmra.mrb[92].mxu1 %v1325_v33  ;;  %v4782_v33 = vld [vmem:[%s6252_s13 + $0x1a8] sm:$0xff]  }
 0x2c9   :  { %4082 = vmatmul.mubr.bf16.gmra.mrb[20].mxu0 %v1756_v41  ;;  %3977 = vmatprep.mubr.msk.bf16.mxu1 %vm4826_vm1, %v5442_v56  ;;  %v4783_v41 = vld [vmem:[%s6252_s13 + $0x1b0] sm:$0xff]  }
 0x2ca   :  { %4085 = vmatprep.mubr.msk.bf16.mxu0 %vm4826_vm1, %v5442_v56 }
 0x2d0   :  { %3978 = vmatmul.mubr.bf16.gmra.mrb[96].mxu1 %v1326_v21  ;;  %v4792_v21 = vld [vmem:[%s6252_s13 + $0x1f8] sm:$0xff]  }
 0x2d1   :  { %4086 = vmatmul.mubr.bf16.gmra.mrb[24].mxu0 %v1757_v50  ;;  %3981 = vmatprep.mubr.msk.bf16.mxu1 %vm4826_vm1, %v5442_v56  ;;  %v2172_v50 = vld [vmem:[#allocation2 + $0x54] sm:$0xff] }
 0x2d2   :  { %4089 = vmatprep.mubr.msk.bf16.mxu0 %vm4826_vm1, %v5442_v56  ;;  %v2185_v54 = vpack.c.bf16 %v2172_v50, %v2171_v16 }
 0x2d8   :  { %3982 = vmatmul.mubr.bf16.gmra.mrb[100].mxu1 %v1327_v0 }
 0x2d9   :  { %4090 = vmatmul.mubr.bf16.gmra.mrb[28].mxu0 %v1758_v42  ;;  %3985 = vmatprep.mubr.msk.bf16.mxu1 %vm4826_vm1, %v5442_v56 }
 0x2da   :  { %4093 = vmatprep.mubr.msk.bf16.mxu0 %vm4826_vm1, %v5442_v56 }
 0x2e0   :  { %3986 = vmatmul.mubr.bf16.gmra.mrb[104].mxu1 %v1328_v1  ;;  %v2176_v1 = vld [vmem:[#allocation2 + $0x74] sm:$0xff] }
 0x2e1   :  { %4094 = vmatmul.mubr.bf16.gmra.mrb[32].mxu0 %v1759_v2  ;;  %3989 = vmatprep.mubr.msk.bf16.mxu1 %vm4826_vm1, %v5442_v56  ;;  %v2187_v12 = vpack.c.bf16 %v2176_v1, %v2175_v11 }
 0x2e2   :  { %4113 = vmatprep.mubr.msk.bf16.mxu0 %vm4826_vm1, %v5442_v56 }
 0x2e8   :  { %3990 = vmatmul.mubr.bf16.gmra.mrb[108].mxu1 %v1329_v20  ;;  %v2178_v20 = vld [vmem:[#allocation2 + $0x84] sm:$0xff] }
 0x2e9   :  { %4114 = vmatmul.mubr.bf16.vlgmr.msra.gmra.mrb[0].mxu0 %v1966_v22  ;;  %3550 = vmatprep.mubr.msk.f32.mxu1 %vm2878_vm5, %v2877_v57 }
 0x2ea   :  { %4150 = vmatpush3.bf16.msra.mxu0 %v4777_v10  ;;  %4117 = vmatprep.mubr.msk.bf16.mxu0 %vm4826_vm1, %v5442_v56 }
 0x2eb   :  { %4151 = vmatprep.subr.bf16.mxu0 %v5442_v56 }
 0x2ee   :  { %4152 = vmatpush3.bf16.msra.mxu0 %v4778_v19 }
 0x2ef   :  { %4153 = vmatprep.subr.bf16.mxu0 %v5442_v56 }
 0x2f1   :  { %4118 = vmatmul.mubr.bf16.gmra.mrb[4].mxu0 %v1967_v27  ;;  %v5937_v27 = vld [vmem:[#allocation2 + $0x90] sm:$0xff] }
 0x2f2   :  { %4121 = vmatprep.mubr.msk.bf16.mxu0 %vm4826_vm1, %v5442_v56  ;;  %4154 = vmatpush3.bf16.msra.mxu0 %v4779_v34  ;;  %v2188_v34 = vpack.c.bf16 %v2178_v20, %v2177_v23 }
 0x2f3   :  { %4155 = vmatprep.subr.bf16.mxu0 %v5442_v56 }
 0x2f6   :  { %4156 = vmatpush3.bf16.msra.mxu0 %v4780_v61 }
 0x2f7   :  { %4157 = vmatprep.subr.bf16.mxu0 %v5442_v56 }
 0x2f9   :  { %4122 = vmatmul.mubr.bf16.gmra.mrb[8].mxu0 %v1968_v37 }
 0x2fa   :  { %4125 = vmatprep.mubr.msk.bf16.mxu0 %vm4826_vm1, %v5442_v56  ;;  %4158 = vmatpush3.bf16.msra.mxu0 %v4781_v32  ;;  %v2180_v32 = vld [vmem:[#allocation2 + $0x94] sm:$0xff] }
 0x2fb   :  { %4159 = vmatprep.subr.bf16.mxu0 %v5442_v56 }
 0x2fe   :  { %4160 = vmatpush3.bf16.msra.mxu0 %v4782_v33 }
 0x2ff   :  { %4161 = vmatprep.subr.bf16.mxu0 %v5442_v56 }
 0x301   :  { %4126 = vmatmul.mubr.bf16.gmra.mrb[12].mxu0 %v1969_v48  ;;  %v4785_v48 = vld [vmem:[%s6252_s13 + $0x1c0] sm:$0xff]  }
 0x302   :  { %4129 = vmatprep.mubr.msk.bf16.mxu0 %vm4826_vm1, %v5442_v56  ;;  %4162 = vmatpush3.bf16.msra.mxu0 %v4783_v41  ;;  %v2189_v41 = vpack.c.bf16 %v2180_v32, %v2179_v30  ;;  %v2392_v32 = vld [vmem:[#allocation2 + $0x7d] sm:$0xff] }
 0x303   :  { %4163 = vmatprep.subr.bf16.mxu0 %v5442_v56 }
 0x306   :  { %4164 = vmatpush3.bf16.msra.mxu0 %v4784_v49  ;;  %v2379_v49 = vld [vmem:[#allocation2 + $0x15] sm:$0xff] }
 0x307   :  { %4201 = vmatprep.subr.bf16.mxu0 %v5442_v56 }
 0x309   :  { %4130 = vmatmul.mubr.bf16.gmra.mrb[16].mxu0 %v1970_v17  ;;  %v2166_v17 = vld [vmem:[#allocation2 + $0x24] sm:$0xff] }
 0x30a   :  { %4133 = vmatprep.mubr.msk.bf16.mxu0 %vm4826_vm1, %v5442_v56 }
 0x311   :  { %4134 = vmatmul.mubr.bf16.gmra.mrb[20].mxu0 %v1971_v3  ;;  %v2182_v3 = vpack.c.bf16 %v2166_v17, %v2165_v29  ;;  %v4795_v17 = vld [vmem:[%s6252_s13 + $0x210] sm:$0xff]  }
 0x312   :  { %4137 = vmatprep.mubr.msk.bf16.mxu0 %vm4826_vm1, %v5442_v56 }
 0x319   :  { %4138 = vmatmul.mubr.bf16.gmra.mrb[24].mxu0 %v1972_v25  ;;  %v2167_v25 = vld [vmem:[#allocation2 + $0x2c] sm:$0xff] }
 0x31a   :  { %4141 = vmatprep.mubr.msk.bf16.mxu0 %vm4826_vm1, %v5442_v56  ;;  %v2183_v39 = vpack.c.bf16 %v2168_v14, %v2167_v25  ;;  %v4797_v14 = vld [vmem:[%s6252_s13 + $0x220] sm:$0xff]  }
 0x321   :  { %4142 = vmatmul.mubr.bf16.gmra.mrb[28].mxu0 %v1973_v46  ;;  %v4790_v46 = vld [vmem:[%s6252_s13 + $0x1e8] sm:$0xff]  }
 0x322   :  { %4145 = vmatprep.mubr.msk.bf16.mxu0 %vm4826_vm1, %v5442_v56 }
 0x329   :  { %4146 = vmatmul.mubr.bf16.gmra.mrb[32].mxu0 %v1974_v8  ;;  %v2378_v8 = vld [vmem:[#allocation2 + $0xd] sm:$0xff] }
 0x32a   :  { %4165 = vmatprep.mubr.msk.bf16.mxu0 %vm4826_vm1, %v5442_v56  ;;  %v2396_v35 = vpack.c.bf16 %v2379_v49, %v2378_v8  ;;  %v2394_v49 = vld [vmem:[#allocation2 + $0x8d] sm:$0xff]  ;;  %v2395_v8 = vld [vmem:[#allocation2 + $0x95] sm:$0xff] }
 0x331   :  { %4166 = vmatmul.mubr.bf16.vlgmr.msra.gmra.mrb[0].mxu0 %v2181_v7  ;;  %v2381_v7 = vld [vmem:[#allocation2 + $0x25] sm:$0xff] }
 0x332   :  { %4202 = vmatpush3.bf16.msra.mxu0 %v4785_v48  ;;  %4169 = vmatprep.mubr.msk.bf16.mxu0 %vm4826_vm1, %v5442_v56  ;;  %v4794_v48 = vld [vmem:[%s6252_s13 + $0x208] sm:$0xff]  }
 0x333   :  { %4203 = vmatprep.subr.bf16.mxu0 %v5442_v56 }
 0x336   :  { %4204 = vmatpush3.bf16.msra.mxu0 %v4786_v9  ;;  %v2380_v9 = vld [vmem:[#allocation2 + $0x1d] sm:$0xff] }
 0x337   :  { %4205 = vmatprep.subr.bf16.mxu0 %v5442_v56  ;;  %v2397_v29 = vpack.c.bf16 %v2381_v7, %v2380_v9  ;;  %v2404_v7 = vpack.c.bf16 %v2395_v8, %v2394_v49 }
 0x339   :  { %4170 = vmatmul.mubr.bf16.gmra.mrb[4].mxu0 %v2182_v3  ;;  %v2383_v3 = vld [vmem:[#allocation2 + $0x35] sm:$0xff] }
 0x33a   :  { %4173 = vmatprep.mubr.msk.bf16.mxu0 %vm4826_vm1, %v5442_v56  ;;  %4206 = vmatpush3.bf16.msra.mxu0 %v4787_v38  ;;  %v4796_v38 = vld [vmem:[%s6252_s13 + $0x218] sm:$0xff]  }
 0x33b   :  { %4207 = vmatprep.subr.bf16.mxu0 %v5442_v56 }
 0x33e   :  { %4208 = vmatpush3.bf16.msra.mxu0 %v4788_v52  ;;  %v2382_v52 = vld [vmem:[#allocation2 + $0x2d] sm:$0xff] }
 0x33f   :  { %4209 = vmatprep.subr.bf16.mxu0 %v5442_v56  ;;  %v2398_v25 = vpack.c.bf16 %v2383_v3, %v2382_v52  ;;  %v2593_v3 = vld [vmem:[#allocation2 + $0xe] sm:$0xff] }
 0x341   :  { %4174 = vmatmul.mubr.bf16.gmra.mrb[8].mxu0 %v2183_v39  ;;  %v2385_v39 = vld [vmem:[#allocation2 + $0x45] sm:$0xff] }
 0x342   :  { %4177 = vmatprep.mubr.msk.bf16.mxu0 %vm4826_vm1, %v5442_v56  ;;  %4210 = vmatpush3.bf16.msra.mxu0 %v4789_v63  ;;  %v4798_v63 = vld [vmem:[%s6252_s13 + $0x228] sm:$0xff]  }
 0x343   :  { %4211 = vmatprep.subr.bf16.mxu0 %v5442_v56 }
 0x346   :  { %4212 = vmatpush3.bf16.msra.mxu0 %v4790_v46  ;;  %v2384_v46 = vld [vmem:[#allocation2 + $0x3d] sm:$0xff] }
 0x347   :  { %4213 = vmatprep.subr.bf16.mxu0 %v5442_v56  ;;  %v2399_v4 = vpack.c.bf16 %v2385_v39, %v2384_v46  ;;  %v2598_v46 = vld [vmem:[#allocation2 + $0x36] sm:$0xff] }
 0x349   :  { %4178 = vmatmul.mubr.bf16.gmra.mrb[12].mxu0 %v2184_v47  ;;  %v2387_v47 = vld [vmem:[#allocation2 + $0x55] sm:$0xff] }
 0x34a   :  { %4181 = vmatprep.mubr.msk.bf16.mxu0 %vm4826_vm1, %v5442_v56  ;;  %4214 = vmatpush3.bf16.msra.mxu0 %v4791_v43  ;;  %v4800_v43 = vld [vmem:[%s6252_s13 + $0x238] sm:$0xff]  }
 0x34b   :  { %4215 = vmatprep.subr.bf16.mxu0 %v5442_v56 }
 0x34e   :  { %4216 = vmatpush3.bf16.msra.mxu0 %v4792_v21  ;;  %v2386_v21 = vld [vmem:[#allocation2 + $0x4d] sm:$0xff] }
 0x34f   :  { %4253 = vmatprep.subr.bf16.mxu0 %v5442_v56  ;;  %v2400_v50 = vpack.c.bf16 %v2387_v47, %v2386_v21  ;;  %v2599_v47 = vld [vmem:[#allocation2 + $0x3e] sm:$0xff] }
 0x351   :  { %4182 = vmatmul.mubr.bf16.gmra.mrb[16].mxu0 %v2185_v54  ;;  %v2389_v54 = vld [vmem:[#allocation2 + $0x65] sm:$0xff] }
 0x352   :  { %4185 = vmatprep.mubr.msk.bf16.mxu0 %vm4826_vm1, %v5442_v56 }
 0x353   :  { %v5921_v62 = vpop.f32.mrb[76].mxu1 }
 0x354   :  { %v3907_v0 = vpop.f32.mrb[77].mxu1 }
 0x355   :  { %v5923_v42 = vpop.f32.mrb[78].mxu1 }
 0x356   :  { %v3908_v18 = vpop.f32.mrb[79].mxu1 }
 0x359   :  { %4186 = vmatmul.mubr.bf16.gmra.mrb[20].mxu0 %v2186_v31  ;;  %v2401_v31 = vpack.c.bf16 %v2389_v54, %v2388_v44  ;;  %v2601_v54 = vld [vmem:[#allocation2 + $0x4e] sm:$0xff]  ;;  %v2603_v44 = vld [vmem:[#allocation2 + $0x5e] sm:$0xff] }
 0x35a   :  { %4189 = vmatprep.mubr.msk.bf16.mxu0 %vm4826_vm1, %v5442_v56 }
 0x35b   :  { %v5927_v53 = vpop.f32.mrb[80].mxu1 }
 0x35c   :  { %v3911_v2 = vpop.f32.mrb[81].mxu1 }
 0x35d   :  { %v5929_v6 = vpop.f32.mrb[82].mxu1  ;;  %v2391_v2 = vld [vmem:[#allocation2 + $0x75] sm:$0xff] }
 0x35e   :  { %v3912_v13 = vpop.f32.mrb[83].mxu1 }
 0x361   :  { %4190 = vmatmul.mubr.bf16.gmra.mrb[24].mxu0 %v2187_v12  ;;  %v2390_v12 = vld [vmem:[#allocation2 + $0x6d] sm:$0xff] }
 0x362   :  { %4193 = vmatprep.mubr.msk.bf16.mxu0 %vm4826_vm1, %v5442_v56 }
 0x363   :  { %v5933_v10 = vpop.f32.mrb[84].mxu1 }
 0x364   :  { %v3915_v22 = vpop.f32.mrb[85].mxu1 }
 0x365   :  { %v5935_v19 = vpop.f32.mrb[86].mxu1  ;;  %v2402_v22 = vpack.c.bf16 %v2391_v2, %v2390_v12 }
 0x366   :  { %v3916_v26 = vpop.f32.mrb[87].mxu1 }
 0x367   :  { %v2393_v26 = vld [vmem:[#allocation2 + $0x85] sm:$0xff] }
 0x369   :  { %4194 = vmatmul.mubr.bf16.gmra.mrb[28].mxu0 %v2188_v34 }
 0x36a   :  { %4197 = vmatprep.mubr.msk.bf16.mxu0 %vm4826_vm1, %v5937_v27 }
 0x36b   :  { %v5941_v61 = vpop.f32.mrb[88].mxu1 }
 0x36c   :  { %v3919_v56 = vpop.f32.mrb[89].mxu1 }
 0x36d   :  { %v5943_v37 = vpop.f32.mrb[90].mxu1 }
 0x36e   :  { %v3920_v33 = vpop.f32.mrb[91].mxu1 }
 0x36f   :  { %v2403_v33 = vpack.c.bf16 %v2393_v26, %v2392_v32 }
 0x371   :  { %4198 = vmatmul.mubr.bf16.gmra.mrb[32].mxu0 %v2189_v41 }
 0x372   :  { %4217 = vmatprep.mubr.msk.bf16.mxu0 %vm4826_vm1, %v5937_v27 }
 0x379   :  { %4218 = vmatmul.mubr.bf16.vlgmr.msra.gmra.mrb[0].mxu0 %v2396_v35 }
 0x37a   :  { %4254 = vmatpush3.bf16.msra.mxu0 %v4793_v24  ;;  %4221 = vmatprep.mubr.msk.bf16.mxu0 %vm4826_vm1, %v5937_v27 }
 0x37b   :  { %4255 = vmatprep.subr.bf16.mxu0 %v5937_v27 }
 0x37e   :  { %4256 = vmatpush3.bf16.msra.mxu0 %v4794_v48 }
 0x37f   :  { %4257 = vmatprep.subr.bf16.mxu0 %v5937_v27 }
 0x381   :  { %4222 = vmatmul.mubr.bf16.gmra.mrb[4].mxu0 %v2397_v29 }
 0x382   :  { %4225 = vmatprep.mubr.msk.bf16.mxu0 %vm4826_vm1, %v5937_v27  ;;  %4258 = vmatpush3.bf16.msra.mxu0 %v4795_v17  ;;  %v2594_v17 = vld [vmem:[#allocation2 + $0x16] sm:$0xff] }
 0x383   :  { %4259 = vmatprep.subr.bf16.mxu0 %v5937_v27 }
 0x386   :  { %4260 = vmatpush3.bf16.msra.mxu0 %v4796_v38 }
 0x387   :  { %4261 = vmatprep.subr.bf16.mxu0 %v5937_v27 }
 0x389   :  { %4226 = vmatmul.mubr.bf16.gmra.mrb[8].mxu0 %v2398_v25  ;;  %v2596_v25 = vld [vmem:[#allocation2 + $0x26] sm:$0xff] }
 0x38a   :  { %4229 = vmatprep.mubr.msk.bf16.mxu0 %vm4826_vm1, %v5937_v27  ;;  %4262 = vmatpush3.bf16.msra.mxu0 %v4797_v14  ;;  %v2611_v14 = vpack.c.bf16 %v2594_v17, %v2593_v3 }
 0x38b   :  { %4263 = vmatprep.subr.bf16.mxu0 %v5937_v27 }
 0x38e   :  { %4264 = vmatpush3.bf16.msra.mxu0 %v4798_v63  ;;  %v2595_v63 = vld [vmem:[#allocation2 + $0x1e] sm:$0xff] }
 0x38f   :  { %4265 = vmatprep.subr.bf16.mxu0 %v5937_v27  ;;  %v2612_v39 = vpack.c.bf16 %v2596_v25, %v2595_v63 }
 0x391   :  { %4230 = vmatmul.mubr.bf16.gmra.mrb[12].mxu0 %v2399_v4 }
 0x392   :  { %4233 = vmatprep.mubr.msk.bf16.mxu0 %vm4826_vm1, %v5937_v27  ;;  %4266 = vmatpush3.bf16.msra.mxu0 %v4799_v28  ;;  %v2597_v28 = vld [vmem:[#allocation2 + $0x2e] sm:$0xff] }
 0x393   :  { %4267 = vmatprep.subr.bf16.mxu0 %v5937_v27  ;;  %v2613_v4 = vpack.c.bf16 %v2598_v46, %v2597_v28 }
 0x396   :  { %4268 = vmatpush3.bf16.msra.mxu0 %v4800_v43  ;;  %v2600_v43 = vld [vmem:[#allocation2 + $0x46] sm:$0xff] }
 0x397   :  { %v2614_v21 = vpack.c.bf16 %v2600_v43, %v2599_v47 }
 0x399   :  { %4234 = vmatmul.mubr.bf16.gmra.mrb[16].mxu0 %v2400_v50  ;;  %v2602_v50 = vld [vmem:[#allocation2 + $0x56] sm:$0xff] }
 0x39a   :  { %4237 = vmatprep.mubr.msk.bf16.mxu0 %vm4826_vm1, %v5937_v27 }
 0x39b   :  { %v5988_v16 = vpop.f32.mrb[92].mxu1 }
 0x39c   :  { %v3975_v40 = vpop.f32.mrb[93].mxu1 }
 0x39d   :  { %v5990_v0 = vpop.f32.mrb[94].mxu1  ;;  %v2615_v40 = vpack.c.bf16 %v2602_v50, %v2601_v54 }
 0x39e   :  { %v3976_v18 = vpop.f32.mrb[95].mxu1 }
 0x39f   :  { %v2616_v18 = vpack.c.bf16 %v5679_v36, %v2603_v44 }
 0x3a1   :  { %4238 = vmatmul.mubr.bf16.gmra.mrb[20].mxu0 %v2401_v31  ;;  %v2610_v31 = vld [vmem:[#allocation2 + $0x96] sm:$0xff] }
 0x3a2   :  { %4241 = vmatprep.mubr.msk.bf16.mxu0 %vm4826_vm1, %v5937_v27  ;;  %v2619_v36 = vpack.c.bf16 %v2610_v31, %v5710_v51 }
 0x3a3   :  { %v5994_v1 = vpop.f32.mrb[96].mxu1 }
 0x3a4   :  { %v3979_v11 = vpop.f32.mrb[97].mxu1 }
 0x3a5   :  { %v5996_v13 = vpop.f32.mrb[98].mxu1 }
 0x3a6   :  { %v3980_v20 = vpop.f32.mrb[99].mxu1 }
 0x3a9   :  { %4242 = vmatmul.mubr.bf16.gmra.mrb[24].mxu0 %v2402_v22 }
 0x3aa   :  { %4245 = vmatprep.mubr.msk.bf16.mxu0 %vm4826_vm1, %v5937_v27 }
 0x3ab   :  { %v6000_v23 = vpop.f32.mrb[100].mxu1 }
 0x3ac   :  { %v3983_v34 = vpop.f32.mrb[101].mxu1 }
 0x3ad   :  { %v6002_v30 = vpop.f32.mrb[102].mxu1 }
 0x3ae   :  { %v3984_v56 = vpop.f32.mrb[103].mxu1 }
 0x3b1   :  { %4246 = vmatmul.mubr.bf16.gmra.mrb[28].mxu0 %v2403_v33 }
 0x3b2   :  { %4249 = vmatprep.mubr.msk.bf16.mxu0 %vm4826_vm1, %v5937_v27 }
 0x3b3   :  { %v6006_v41 = vpop.f32.mrb[104].mxu1 }
 0x3b4   :  { %v3987_v24 = vpop.f32.mrb[105].mxu1 }
 0x3b5   :  { %v6008_v35 = vpop.f32.mrb[106].mxu1 }
 0x3b6   :  { %v3988_v48 = vpop.f32.mrb[107].mxu1 }
 0x3b9   :  { %4250 = vmatmul.mubr.bf16.gmra.mrb[32].mxu0 %v2404_v7 }
 0x3ba   :  { %4269 = vmatprep.mubr.msk.bf16.mxu0 %vm4826_vm1, %v5937_v27 }
 0x3bb   :  { %v6012_v9 = vpop.f32.mrb[108].mxu1 }
 0x3bc   :  { %v3991_v29 = vpop.f32.mrb[109].mxu1 }
 0x3bd   :  { %v6014_v38 = vpop.f32.mrb[110].mxu1 }
 0x3be   :  { %v3992_v52 = vpop.f32.mrb[111].mxu1 }
 0x3c1   :  { %4270 = vmatmul.mubr.bf16.vlgmr.msra.gmra.mrb[0].mxu0 %v2611_v14 }
 0x3c2   :  { %4273 = vmatprep.mubr.msk.bf16.mxu0 %vm4826_vm1, %v5937_v27 }
 0x3c9   :  { %4274 = vmatmul.mubr.bf16.gmra.mrb[4].mxu0 %v2612_v39 }
 0x3ca   :  { %4277 = vmatprep.mubr.msk.bf16.mxu0 %vm4826_vm1, %v5937_v27 }
 0x3d1   :  { %4278 = vmatmul.mubr.bf16.gmra.mrb[8].mxu0 %v2613_v4 }
 0x3d2   :  { %4281 = vmatprep.mubr.msk.bf16.mxu0 %vm4826_vm1, %v5937_v27 }
 0x3d9   :  { %4282 = vmatmul.mubr.bf16.gmra.mrb[12].mxu0 %v2614_v21 }
 0x3da   :  { %4285 = vmatprep.mubr.msk.bf16.mxu0 %vm4826_vm1, %v5937_v27 }
 0x3e1   :  { %4286 = vmatmul.mubr.bf16.gmra.mrb[16].mxu0 %v2615_v40 }
 0x3e2   :  { %4289 = vmatprep.mubr.msk.bf16.mxu0 %vm4826_vm1, %v5937_v27 }
 0x3e9   :  { %4290 = vmatmul.mubr.bf16.gmra.mrb[20].mxu0 %v2616_v18 }
 0x3ea   :  { %4293 = vmatprep.mubr.msk.bf16.mxu0 %vm4826_vm1, %v5937_v27 }
 0x3f1   :  { %4294 = vmatmul.mubr.bf16.gmra.mrb[24].mxu0 %v2617_v60  ;;  %v6047_v60 = vld [vmem:[%s6257_s14] ss:$0 sm:$0xff] }
 0x3f2   :  { %4297 = vmatprep.mubr.msk.bf16.mxu0 %vm4826_vm1, %v5937_v27 }
 0x3f9   :  { %4298 = vmatmul.mubr.bf16.gmra.mrb[28].mxu0 %v2618_v58  ;;  %v6053_v58 = vld [vmem:[%s6258_s15] ss:$0 sm:$0xff] }
 0x3fa   :  { %4301 = vmatprep.mubr.msk.bf16.mxu0 %vm4826_vm1, %v5937_v27 }
 0x401   :  { %4302 = vmatmul.mubr.bf16.gmra.mrb[32].mxu0 %v2619_v36 }
 0x494   :  { %v2719_v59 = vpop.f32.mrb[0].mxu0 }
 0x495   :  { %v4427_v55 = vadd.f32 %v2719_v59, %v5921_v62  ;;  %v4271_v15 = vpop.f32.mrb[1].mxu0 }
 0x496   :  { %v2722_v51 = vpop.f32.mrb[2].mxu0 }
 0x497   :  { %v2815_v2 = vmul.f32 %v4427_v55, %v6047_v60  ;;  %v4428_v11 = vadd.f32 %v2722_v51, %v5923_v42  ;;  %v4272_v12 = vpop.f32.mrb[3].mxu0 }
 0x499   :  { %v2840_v20 = vadd.f32 %v6053_v58, %v2815_v2  ;;  %v2816_v22 = vmul.f32 %v4428_v11, %v6047_v60 }
 0x49b   :  { %v2841_v26 = vadd.f32 %v6053_v58, %v2816_v22  ;;  %v2858_v62 = vmax.f32 %v2840_v20, 0.0 }
 0x49c   :  { %v2727_v34 = vpop.f32.mrb[4].mxu0 }
 0x49d   :  { %v2859_v32 = vmax.f32 %v2841_v26, 0.0  ;;  %v4429_v56 = vadd.f32 %v2727_v34, %v5927_v53  ;;  %v4275_v33 = vpop.f32.mrb[5].mxu0 }
 0x49e   :  { %v2730_v49 = vpop.f32.mrb[6].mxu0 }
 0x49f   :  { %v6061_v8 = vpack.c.bf16 %v2859_v32, %v2858_v62  ;;  %v2817_v24 = vmul.f32 %v4429_v56, %v6047_v60  ;;  %v4430_v42 = vadd.f32 %v2730_v49, %v5929_v6  ;;  %v4276_v48 = vpop.f32.mrb[7].mxu0 }
 0x4a1   :  { %v2842_v7 = vadd.f32 %v6053_v58, %v2817_v24  ;;  %v2818_v17 = vmul.f32 %v4430_v42, %v6047_v60  ;;  %4359 = vmatpush1.bf16.msra.mxu1 %v6061_v8 }
 0x4a2   :  { %4360 = vmatprep.subr.bf16.mxu1 %v4827_v5 }
 0x4a3   :  { %v2843_v29 = vadd.f32 %v6053_v58, %v2818_v17  ;;  %v2860_v3 = vmax.f32 %v2842_v7, 0.0 }
 0x4a4   :  { %v2735_v53 = vpop.f32.mrb[8].mxu0 }
 0x4a5   :  { %v2861_v52 = vmax.f32 %v2843_v29, 0.0  ;;  %v4431_v14 = vadd.f32 %v2735_v53, %v5933_v10  ;;  %v4279_v25 = vpop.f32.mrb[9].mxu0 }
 0x4a6   :  { %v2738_v63 = vpop.f32.mrb[10].mxu0 }
 0x4a7   :  { %v6071_v39 = vpack.c.bf16 %v2861_v52, %v2860_v3  ;;  %v2819_v6 = vmul.f32 %v4431_v14, %v6047_v60  ;;  %v4432_v46 = vadd.f32 %v2738_v63, %v5935_v19  ;;  %v4280_v28 = vpop.f32.mrb[11].mxu0 }
 0x4a9   :  { %v2844_v4 = vadd.f32 %v6053_v58, %v2819_v6  ;;  %v2820_v43 = vmul.f32 %v4432_v46, %v6047_v60  ;;  %4362 = vmatpush1.bf16.msra.mxu1 %v6071_v39 }
 0x4aa   :  { %4363 = vmatprep.subr.bf16.mxu1 %v4827_v5 }
 0x4ab   :  { %v2845_v47 = vadd.f32 %v6053_v58, %v2820_v43  ;;  %v2862_v21 = vmax.f32 %v2844_v4, 0.0 }
 0x4ac   :  { %v2743_v10 = vpop.f32.mrb[12].mxu0 }
 0x4ad   :  { %v2863_v50 = vmax.f32 %v2845_v47, 0.0  ;;  %v4433_v54 = vadd.f32 %v2743_v10, %v5941_v61  ;;  %v4283_v40 = vpop.f32.mrb[13].mxu0 }
 0x4ae   :  { %v2746_v44 = vpop.f32.mrb[14].mxu0 }
 0x4af   :  { %v6081_v18 = vpack.c.bf16 %v2863_v50, %v2862_v21  ;;  %v2821_v19 = vmul.f32 %v4433_v54, %v6047_v60  ;;  %v4434_v31 = vadd.f32 %v2746_v44, %v5943_v37  ;;  %v4284_v36 = vpop.f32.mrb[15].mxu0 }
 0x4b1   :  { %v2846_v57 = vadd.f32 %v6053_v58, %v2821_v19  ;;  %v2822_v59 = vmul.f32 %v4434_v31, %v6047_v60  ;;  %4365 = vmatpush1.bf16.msra.mxu1 %v6081_v18 }
 0x4b2   :  { %4366 = vmatprep.subr.bf16.mxu1 %v4827_v5 }
 0x4b3   :  { %v2847_v55 = vadd.f32 %v6053_v58, %v2822_v59  ;;  %v2864_v15 = vmax.f32 %v2846_v57, 0.0 }
 0x4b4   :  { %v2751_v61 = vpop.f32.mrb[16].mxu0 }
 0x4b5   :  { %v2865_v51 = vmax.f32 %v2847_v55, 0.0  ;;  %v4435_v2 = vadd.f32 %v2751_v61, %v5988_v16  ;;  %v4287_v11 = vpop.f32.mrb[17].mxu0 }
 0x4b6   :  { %v2754_v12 = vpop.f32.mrb[18].mxu0 }
 0x4b7   :  { %v6091_v20 = vpack.c.bf16 %v2865_v51, %v2864_v15  ;;  %v2823_v37 = vmul.f32 %v4435_v2, %v6047_v60  ;;  %v4436_v22 = vadd.f32 %v2754_v12, %v5990_v0  ;;  %v4288_v26 = vpop.f32.mrb[19].mxu0 }
 0x4b9   :  { %v2848_v34 = vadd.f32 %v6053_v58, %v2823_v37  ;;  %v2824_v62 = vmul.f32 %v4436_v22, %v6047_v60  ;;  %4368 = vmatpush1.bf16.msra.mxu1 %v6091_v20 }
 0x4ba   :  { %4369 = vmatprep.subr.bf16.mxu1 %v4827_v5 }
 0x4bb   :  { %v2849_v32 = vadd.f32 %v6053_v58, %v2824_v62  ;;  %v2866_v56 = vmax.f32 %v2848_v34, 0.0 }
 0x4bc   :  { %v2759_v16 = vpop.f32.mrb[20].mxu0 }
 0x4bd   :  { %v2867_v33 = vmax.f32 %v2849_v32, 0.0  ;;  %v4437_v49 = vadd.f32 %v2759_v16, %v5994_v1  ;;  %v4291_v24 = vpop.f32.mrb[21].mxu0 }
 0x4be   :  { %v2762_v42 = vpop.f32.mrb[22].mxu0  ;;  %v3305_v24 = vld [vmem:[%s6262_s7] ss:$0 sm:$0xff] }
 0x4bf   :  { %v6101_v48 = vpack.c.bf16 %v2867_v33, %v2866_v56  ;;  %v2825_v0 = vmul.f32 %v4437_v49, %v6047_v60  ;;  %v4438_v7 = vadd.f32 %v2762_v42, %v5996_v13  ;;  %v4292_v17 = vpop.f32.mrb[23].mxu0  ;;  %v2876_v56 = vld [vmem:[%s6255_s2] sm:$0xff]  ;;  %v4807_v33 = vld [vmem:[%s6256_s17 + $0x30] sm:$0xff]   ;;  %v4808_v49 = vld [vmem:[%s6256_s17 + $0x38] sm:$0xff]   ;;  %v232_v42 = vadd.f32 %v3305_v24, %v5361_v45 }
 0x4c1   :  { %v2850_v29 = vadd.f32 %v6053_v58, %v2825_v0  ;;  %v2826_v53 = vmul.f32 %v4438_v7, %v6047_v60  ;;  %4371 = vmatpush1.bf16.msra.mxu1 %v6101_v48  ;;  %v3308_v7 = vld [vmem:[%s6264_s9] ss:$0 sm:$0xff] }
 0x4c2   :  { %4372 = vmatprep.subr.bf16.mxu1 %v4827_v5 }
 0x4c3   :  { %v2851_v3 = vadd.f32 %v6053_v58, %v2826_v53  ;;  %v2868_v52 = vmax.f32 %v2850_v29, 0.0  ;;  %v4809_v29 = vld [vmem:[%s6260_s16] sm:$0xff]  }
 0x4c4   :  { %v2767_v1 = vpop.f32.mrb[24].mxu0 }
 0x4c5   :  { %v2869_v14 = vmax.f32 %v2851_v3, 0.0  ;;  %v4439_v25 = vadd.f32 %v2767_v1, %v6000_v23  ;;  %v4295_v63 = vpop.f32.mrb[25].mxu0 }
 0x4c6   :  { %v2770_v6 = vpop.f32.mrb[26].mxu0  ;;  %v4812_v63 = vld [vmem:[%s6261_s18 + $0x10] sm:$0xff]  }
 0x4c7   :  { %v4373_v46 = vpack.c.bf16 %v2869_v14, %v2868_v52  ;;  %v2827_v13 = vmul.f32 %v4439_v25, %v6047_v60  ;;  %v4440_v28 = vadd.f32 %v2770_v6, %v6002_v30  ;;  %v4296_v4 = vpop.f32.mrb[27].mxu0  ;;  %v4810_v52 = vld [vmem:[%s6261_s18] sm:$0xff]   ;;  %v4811_v25 = vld [vmem:[%s6261_s18 + $0x8] sm:$0xff]   ;;  %v4813_v6 = vld [vmem:[%s6261_s18 + $0x18] sm:$0xff]  }
 0x4c9   :  { %v2852_v43 = vadd.f32 %v6053_v58, %v2827_v13  ;;  %v2828_v47 = vmul.f32 %v4440_v28, %v6047_v60  ;;  %4374 = vmatpush1.bf16.msra.mxu1 %v4373_v46  ;;  %v4815_v13 = vld [vmem:[%s6261_s18 + $0x28] sm:$0xff]   ;;  %v4816_v28 = vld [vmem:[%s6261_s18 + $0x30] sm:$0xff]  }
 0x4ca   :  { %4375 = vmatprep.subr.bf16.mxu1 %v4827_v5 }
 0x4cb   :  { %v2853_v10 = vadd.f32 %v6053_v58, %v2828_v47  ;;  %v2870_v50 = vmax.f32 %v2852_v43, 0.0  ;;  %v4817_v43 = vld [vmem:[%s6261_s18 + $0x38] sm:$0xff]  }
 0x4cc   :  { %v2775_v21 = vpop.f32.mrb[28].mxu0 }
 0x4cd   :  { %v2871_v23 = vmax.f32 %v2853_v10, 0.0  ;;  %v4441_v54 = vadd.f32 %v2775_v21, %v6006_v41  ;;  %v4299_v40 = vpop.f32.mrb[29].mxu0 }
 0x4ce   :  { %v2778_v44 = vpop.f32.mrb[30].mxu0 }
 0x4cf   :  { %v4376_v19 = vpack.c.bf16 %v2871_v23, %v2870_v50  ;;  %v2829_v30 = vmul.f32 %v4441_v54, %v6047_v60  ;;  %v4442_v31 = vadd.f32 %v2778_v44, %v6008_v35  ;;  %v4300_v36 = vpop.f32.mrb[31].mxu0 }
 0x4d1   :  { %v2854_v57 = vadd.f32 %v6053_v58, %v2829_v30  ;;  %v2830_v59 = vmul.f32 %v4442_v31, %v6047_v60  ;;  %4377 = vmatpush1.bf16.msra.mxu1 %v4376_v19 }
 0x4d2   :  { %4378 = vmatprep.subr.bf16.mxu1 %v4827_v5 }
 0x4d3   :  { %v2855_v55 = vadd.f32 %v6053_v58, %v2830_v59  ;;  %v2872_v15 = vmax.f32 %v2854_v57, 0.0  ;;  %v3570_v57 = vld [vmem:[%s6265_s19] ss:$0 sm:$0xff] }
 0x4d4   :  { %v2783_v61 = vpop.f32.mrb[32].mxu0 }
 0x4d5   :  { %v2873_v41 = vmax.f32 %v2855_v55, 0.0  ;;  %v4443_v51 = vadd.f32 %v2783_v61, %v6012_v9  ;;  %v4303_v2 = vpop.f32.mrb[33].mxu0 }
 0x4d6   :  { %v2786_v11 = vpop.f32.mrb[34].mxu0 }
 0x4d7   :  { %v4379_v12 = vpack.c.bf16 %v2873_v41, %v2872_v15  ;;  %v2831_v35 = vmul.f32 %v4443_v51, %v6047_v60  ;;  %v4444_v37 = vadd.f32 %v2786_v11, %v6014_v38  ;;  %v4304_v22 = vpop.f32.mrb[35].mxu0  ;;  %v2953_v38 = vld [vmem:[%s6259_s3 + $0x8] sm:$0xff] }
 0x4d9   :  { %v2856_v26 = vadd.f32 %v6053_v58, %v2831_v35  ;;  %v2832_v34 = vmul.f32 %v4444_v37, %v6047_v60  ;;  %4380 = vmatpush1.bf16.msra.mxu1 %v4379_v12  ;;  %v2952_v60 = vld [vmem:[%s6259_s3] sm:$0xff] }
 0x4da   :  { %4381 = vmatprep.subr.bf16.mxu1 %v4827_v5 }
 0x4db   :  { %v2857_v62 = vadd.f32 %v6053_v58, %v2832_v34  ;;  %v2874_v32 = vmax.f32 %v2856_v26, 0.0  ;;  %v4801_v58 = vld [vmem:[%s6256_s17] sm:$0xff]  }
 0x4dd   :  { %v2875_v16 = vmax.f32 %v2857_v62, 0.0 }
 0x4df   :  { %v4382_v9 = vpack.c.bf16 %v2875_v16, %v2874_v32 }
 0x4e1   :  { %4383 = vmatpush1.bf16.msra.mxu1 %v4382_v9 }
 0x4e2   :  { %4384 = vmatprep.subr.bf16.mxu1 %v4827_v5 }
 0x4e4   :  { %2947 = vmatmul.mubr.f32.vlgmr.msra.gmra.mrb[112].mxu1 %v2876_v56 }
 0x4e5   :  { %4386 = vmatpush1.bf16.msra.mxu1 %v6061_v8  ;;  %3551 = vmatprep.mubr.msk.f32.mxu1 %vm2878_vm5, %v2953_v38  ;;  %v4802_v8 = vld [vmem:[%s6256_s17 + $0x8] sm:$0xff]  }
 0x4e6   :  { %4387 = vmatprep.subr.bf16.mxu1 %v4827_v5 }
 0x4e9   :  { %4389 = vmatpush1.bf16.msra.mxu1 %v6071_v39  ;;  %v4804_v39 = vld [vmem:[%s6256_s17 + $0x18] sm:$0xff]  }
 0x4ea   :  { %4390 = vmatprep.subr.bf16.mxu1 %v4827_v5 }
 0x4ed   :  { %4392 = vmatpush1.bf16.msra.mxu1 %v6081_v18  ;;  %v4805_v18 = vld [vmem:[%s6256_s17 + $0x20] sm:$0xff]  }
 0x4ee   :  { %4393 = vmatprep.subr.bf16.mxu1 %v4827_v5 }
 0x4f1   :  { %4395 = vmatpush1.bf16.msra.mxu1 %v6091_v20  ;;  %v4806_v20 = vld [vmem:[%s6256_s17 + $0x28] sm:$0xff]  }
 0x4f2   :  { %4396 = vmatprep.subr.bf16.mxu1 %v4827_v5 }
 0x4f5   :  { %4398 = vmatpush1.bf16.msra.mxu1 %v6101_v48  ;;  %v3307_v48 = vld [vmem:[%s6263_s8] ss:$0 sm:$0xff] }
 0x4f6   :  { %4399 = vmatprep.subr.bf16.mxu1 %v4827_v5  ;;  %v242_v0 = vmul.f32 %v3307_v48, %v232_v42 }
 0x4f8   :  { %v250_v53 = vadd.f32 %v3308_v7, %v242_v0 }
 0x4f9   :  { %4401 = vmatpush1.bf16.msra.mxu1 %v4373_v46  ;;  %v4814_v46 = vld [vmem:[%s6261_s18 + $0x20] sm:$0xff]  }
 0x4fa   :  { %4402 = vmatprep.subr.bf16.mxu1 %v4827_v5  ;;  %v251_v45 = vmax.f32 %v250_v53, 0.0 }
 0x4fc   :  { %v3027_v14 = vpack.c.bf16 %v251_v45, %v251_v45 }
 0x4fd   :  { %4404 = vmatpush1.bf16.msra.mxu1 %v4376_v19 }
 0x4fe   :  { %4405 = vmatprep.subr.bf16.mxu1 %v4827_v5 }
 0x501   :  { %4407 = vmatpush1.bf16.msra.mxu1 %v4379_v12 }
 0x502   :  { %4408 = vmatprep.subr.bf16.mxu1 %v4827_v5  ;;  %v4803_v5 = vld [vmem:[%s6256_s17 + $0x10] sm:$0xff]  }
 0x505   :  { %4410 = vmatpush1.bf16.msra.mxu1 %v4382_v9 }
 0x506   :  { %4305 = vmatprep.subr.bf16.mxu1 %v5937_v27 }
 0x508   :  { %3022 = vmatmul.mubr.f32.vlgmr.msra.gmra.mrb[114].mxu1 %v2952_v60 }
 0x509   :  { %4306 = vmatpush3.bf16.msra.mxu1 %v4801_v58  ;;  %4321 = vmatprep.mubr.msk.bf16.mxu1 %vm4826_vm1, %v5937_v27 }
 0x50a   :  { %4307 = vmatprep.subr.bf16.mxu1 %v5937_v27 }
 0x50d   :  { %4308 = vmatpush3.bf16.msra.mxu1 %v4802_v8 }
 0x50e   :  { %4309 = vmatprep.subr.bf16.mxu1 %v5937_v27 }
 0x511   :  { %4310 = vmatpush3.bf16.msra.mxu1 %v4803_v5 }
 0x512   :  { %4311 = vmatprep.subr.bf16.mxu1 %v5937_v27 }
 0x515   :  { %4312 = vmatpush3.bf16.msra.mxu1 %v4804_v39 }
 0x516   :  { %4313 = vmatprep.subr.bf16.mxu1 %v5937_v27 }
 0x519   :  { %4314 = vmatpush3.bf16.msra.mxu1 %v4805_v18 }
 0x51a   :  { %4315 = vmatprep.subr.bf16.mxu1 %v5937_v27 }
 0x51d   :  { %4316 = vmatpush3.bf16.msra.mxu1 %v4806_v20 }
 0x51e   :  { %4317 = vmatprep.subr.bf16.mxu1 %v5937_v27 }
 0x521   :  { %4318 = vmatpush3.bf16.msra.mxu1 %v4807_v33 }
 0x522   :  { %4319 = vmatprep.subr.bf16.mxu1 %v5937_v27 }
 0x525   :  { %4320 = vmatpush3.bf16.msra.mxu1 %v4808_v49 }
 0x526   :  { %4325 = vmatprep.subr.bf16.mxu1 %v5937_v27 }
 0x5b7   :  { %v2948_v17 = vpop.f32.mrb[112].mxu1 }
 0x5b8   :  { %v3030_v3 = vpack.c.bf16 %v2948_v17, %v2948_v17  ;;  %v2950_v1 = vpop.f32.mrb[113].mxu1 }
 0x5ba   :  { %4322 = vmatmul.mubr.bf16.vlgmr.msra.gmra.mrb[116].mxu1 %v3030_v3 }
 0x5bb   :  { %4326 = vmatpush3.bf16.msra.mxu1 %v4809_v29  ;;  %4327 = vmatprep.mubr.msk.bf16.mxu1 %vm4826_vm1, %v5937_v27 }
 0x5bc   :  { %4331 = vmatprep.subr.bf16.mxu1 %v5937_v27 }
 0x5c2   :  { %4328 = vmatmul.mubr.msk.bf16.vlgmr.msra.gmra.mrb[120].mxu1 %vm2878_vm5, %v3027_v14 }
 0x5c3   :  { %4332 = vmatpush3.bf16.msra.mxu1 %v4810_v52  ;;  %4347 = vmatprep.mubr.msk.bf16.mxu1 %vm4826_vm1, %v5937_v27 }
 0x5c4   :  { %4333 = vmatprep.subr.bf16.mxu1 %v5937_v27 }
 0x5c7   :  { %4334 = vmatpush3.bf16.msra.mxu1 %v4811_v25 }
 0x5c8   :  { %4335 = vmatprep.subr.bf16.mxu1 %v5937_v27 }
 0x5cb   :  { %4336 = vmatpush3.bf16.msra.mxu1 %v4812_v63 }
 0x5cc   :  { %4337 = vmatprep.subr.bf16.mxu1 %v5937_v27 }
 0x5cf   :  { %4338 = vmatpush3.bf16.msra.mxu1 %v4813_v6 }
 0x5d0   :  { %4339 = vmatprep.subr.bf16.mxu1 %v5937_v27 }
 0x5d3   :  { %4340 = vmatpush3.bf16.msra.mxu1 %v4814_v46 }
 0x5d4   :  { %4341 = vmatprep.subr.bf16.mxu1 %v5937_v27 }
 0x5d7   :  { %4342 = vmatpush3.bf16.msra.mxu1 %v4815_v13 }
 0x5d8   :  { %4343 = vmatprep.subr.bf16.mxu1 %v5937_v27 }
 0x5db   :  { %4344 = vmatpush3.bf16.msra.mxu1 %v4816_v28  ;;  %v3023_v4 = vpop.f32.mrb[114].mxu1 }
 0x5dc   :  { %4345 = vmatprep.subr.bf16.mxu1 %v5937_v27  ;;  %v3025_v47 = vpop.f32.mrb[115].mxu1  ;;  %v3184_v10 = vpack.c.bf16 %v3023_v4, %v3023_v4 }
 0x5df   :  { %4346 = vmatpush3.bf16.msra.mxu1 %v4817_v43 }
 0x5e2   :  { %4348 = vmatmul.mubr.bf16.vlgmr.msra.gmra.mrb[124].mxu1 %v3184_v10 }
 0x68d   :  { %v3129_v21 = vpop.f32.mrb[116].mxu1 }
 0x68e   :  { %v4323_v50 = vpop.f32.mrb[117].mxu1 }
 0x68f   :  { %v3132_v23 = vpop.f32.mrb[118].mxu1 }
 0x690   :  { %v4324_v54 = vpop.f32.mrb[119].mxu1 }
 0x695   :  { %v3178_v40 = vpop.f32.mrb[120].mxu1 }
 0x696   :  { %v3179_v44 = vadd.f32 %v3178_v40, %v3129_v21  ;;  %v4329_v19 = vpop.f32.mrb[121].mxu1 }
 0x697   :  { %v3181_v30 = vpop.f32.mrb[122].mxu1 }
 0x698   :  { %v4330_v31 = vpop.f32.mrb[123].mxu1 }
 0x6b5   :  { %v3283_v36 = vpop.f32.mrb[124].mxu1 }
 0x6b6   :  { %v3289_v59 = vadd.f32 %v3283_v36, %v3179_v44  ;;  %v4349_v27 = vpop.f32.mrb[125].mxu1 }
 0x6b7   :  { %v3286_v55 = vpop.f32.mrb[126].mxu1 }
 0x6b8   :  { %v3297_v61 = vadd.f32 %v3570_v57, %v3289_v59  ;;  %v4350_v15 = vpop.f32.mrb[127].mxu1 }
 0x6ba   :  { %3298 = vst [vmem:[%s6266_s20] sm:$0xff] %v3297_v61 }

</bundles_post_ra>
